<compile_context>
chip_gen: v5e
topology: v5e:2x2
jax: 0.10.0
libtpu: 0.0.40
codegen_flags: <defaults>
</compile_context>

<pallas_src>
import jax
import jax.numpy as jnp
from jax import lax
from jax.experimental import pallas as pl
from jax.experimental.pallas import tpu as pltpu  # noqa: F401  (kept for parity)

# ---------------- small synthetic BERT config ----------------
VOCAB = 100
TYPE_VOCAB = 2
MAX_POS = 16
HIDDEN = 32
NUM_HEADS = 4
HEAD_DIM = HIDDEN // NUM_HEADS
INTERMEDIATE = 64
NUM_LAYERS = 2
LN_EPS = 1e-12
BATCH = 2
SEQ = 8
ATTN_SCALE = 1.0 / (HEAD_DIM ** 0.5)

# packed embedding-table layout (rows padded to multiples of 8 so the static
# sublane slices inside the kernel stay aligned)
WORD_PAD = ((VOCAB + 7) // 8) * 8            # 104
POS_OFF = WORD_PAD                           # 104
TYPE_PAD = 8
TYPE_OFF = POS_OFF + MAX_POS                 # 120
TABLE_ROWS = TYPE_OFF + TYPE_PAD             # 128

# packed small-vector layout: every bias / LayerNorm gamma,beta in one array
VEC_W = 3 * HIDDEN                           # 96 lanes per row
EMB_G, EMB_B = 0, 1
L_BASE = 2
L_STRIDE = 8
QKV_B, O_B, LN1_G, LN1_B, FI_B, FO_B, LN2_G, LN2_B = range(8)
VEC_ROWS = L_BASE + L_STRIDE * NUM_LAYERS    # 18


# ---------------- in-kernel helpers ----------------
def _layernorm(x, g, b):
    mu = jnp.mean(x, axis=-1, keepdims=True)
    var = jnp.mean((x - mu) ** 2, axis=-1, keepdims=True)
    return (x - mu) * lax.rsqrt(var + LN_EPS) * g + b


def _gelu(x):
    # exact (erf-based) GELU, matching HF BERT's "gelu" activation
    return 0.5 * x * (1.0 + lax.erf(x * 0.7071067811865476))


# ---------------- fused whole-model kernel (single step, whole batch) --------
def _bert_kernel(ids_ref, typ_ref, mask_ref, tab_ref,
                 qkvw_ref, ow_ref, fiw_ref, fow_ref, vec_ref,
                 hid_ref, cls_ref):
    BS = BATCH * SEQ
    tab = tab_ref[...]                        # (128, 32)  word|pos|type tables
    vecs = vec_ref[...]                       # (18, 96)   all biases / LN params

    def vec(row, width):                      # (1, width) static value slice
        return vecs[row:row + 1, :width]

    # ---- embeddings: exact one-hot MXU gathers + static position add ----
    ids = ids_ref[...]                        # (BS, 1) int32
    typ = typ_ref[...]                        # (BS, 1) int32
    word_oh = (lax.broadcasted_iota(jnp.int32, (BS, WORD_PAD), 1) == ids
               ).astype(jnp.float32)
    type_oh = (lax.broadcasted_iota(jnp.int32, (BS, TYPE_PAD), 1) == typ
               ).astype(jnp.float32)
    emb = (jnp.dot(word_oh, tab[:WORD_PAD, :], preferred_element_type=jnp.float32)
           + jnp.dot(type_oh, tab[TYPE_OFF:TYPE_OFF + TYPE_PAD, :],
                     preferred_element_type=jnp.float32)
           + jnp.concatenate([tab[POS_OFF:POS_OFF + SEQ, :]] * BATCH, axis=0))
    h = _layernorm(emb, vec(EMB_G, HIDDEN), vec(EMB_B, HIDDEN))       # (BS, H)

    # ---- additive attention mask, broadcast + stacked ONCE (hoisted) ----
    neg = (1.0 - mask_ref[...]) * -10000.0                            # (B, S)
    mask_stack = jnp.concatenate(
        [jnp.broadcast_to(neg[b:b + 1, :], (SEQ, SEQ))
         for b in range(BATCH) for _ in range(NUM_HEADS)], axis=0)    # (B*NH*S, S)

    for l in range(NUM_LAYERS):                                       # static unroll
        base = L_BASE + L_STRIDE * l

        # fused QKV projection on the flattened batch: (BS,H)@(H,3H)
        # (Q weights/bias were pre-scaled by 1/sqrt(head_dim) at pack time.)
        qkv = jnp.dot(h, qkvw_ref[l], preferred_element_type=jnp.float32) \
            + vec(base + QKV_B, 3 * HIDDEN)                           # (BS, 3H)

        # per-(batch, head) scores, sublane-stacked so softmax runs once
        s_parts = []
        for b in range(BATCH):
            r = b * SEQ
            q = qkv[r:r + SEQ, 0:HIDDEN]
            k = qkv[r:r + SEQ, HIDDEN:2 * HIDDEN]
            for hd in range(NUM_HEADS):
                lo = hd * HEAD_DIM
                s_parts.append(jnp.dot(q[:, lo:lo + HEAD_DIM],
                                       k[:, lo:lo + HEAD_DIM].T,
                                       preferred_element_type=jnp.float32))
        s = jnp.concatenate(s_parts, axis=0) + mask_stack             # (B*NH*S, S)
        s = s - jnp.max(s, axis=-1, keepdims=True)
        p = jnp.exp(s)
        p = p * pl.reciprocal(jnp.sum(p, axis=-1, keepdims=True), approx=True)

        # per-head context, lane-merged to (BS,H); ONE output-projection GEMM
        ctx_parts = []
        for b in range(BATCH):
            r = b * SEQ
            v = qkv[r:r + SEQ, 2 * HIDDEN:3 * HIDDEN]
            heads = []
            for hd in range(NUM_HEADS):
                row = (b * NUM_HEADS + hd) * SEQ
                lo = hd * HEAD_DIM
                heads.append(jnp.dot(p[row:row + SEQ, :], v[:, lo:lo + HEAD_DIM],
                                     preferred_element_type=jnp.float32))
            ctx_parts.append(jnp.concatenate(heads, axis=-1))         # (S, H)
        ctx = jnp.concatenate(ctx_parts, axis=0)                      # (BS, H)
        attn = jnp.dot(ctx, ow_ref[l], preferred_element_type=jnp.float32) \
            + vec(base + O_B, HIDDEN)

        # add & LayerNorm
        h = _layernorm(attn + h, vec(base + LN1_G, HIDDEN), vec(base + LN1_B, HIDDEN))

        # feed-forward: GELU(h Wi + bi) Wo + bo, add & LayerNorm
        ff = jnp.dot(h, fiw_ref[l], preferred_element_type=jnp.float32) \
            + vec(base + FI_B, INTERMEDIATE)
        ff = _gelu(ff)
        ff = jnp.dot(ff, fow_ref[l], preferred_element_type=jnp.float32) \
            + vec(base + FO_B, HIDDEN)
        h = _layernorm(ff + h, vec(base + LN2_G, HIDDEN), vec(base + LN2_B, HIDDEN))

    # ---- outputs: full last_hidden_state + fused [CLS] slice ----
    for b in range(BATCH):
        hid_ref[b, :, :] = h[b * SEQ:(b + 1) * SEQ, :]
    cls_ref[...] = jnp.concatenate(
        [h[b * SEQ:b * SEQ + 1, :] for b in range(BATCH)], axis=0)


# ---------------- parameters ----------------
def init_params(key):
    keys = iter(jax.random.split(key, 64))

    def norm(shape):
        return 0.02 * jax.random.normal(next(keys), shape, jnp.float32)

    params = {
        "word_emb": norm((VOCAB, HIDDEN)),
        "pos_emb": norm((MAX_POS, HIDDEN)),
        "type_emb": norm((TYPE_VOCAB, HIDDEN)),
        "emb_ln_g": jnp.ones((HIDDEN,), jnp.float32),
        "emb_ln_b": jnp.zeros((HIDDEN,), jnp.float32),
        "layers": [],
    }
    for _ in range(NUM_LAYERS):
        params["layers"].append({
            "q_w": norm((HIDDEN, HIDDEN)), "q_b": jnp.zeros((HIDDEN,), jnp.float32),
            "k_w": norm((HIDDEN, HIDDEN)), "k_b": jnp.zeros((HIDDEN,), jnp.float32),
            "v_w": norm((HIDDEN, HIDDEN)), "v_b": jnp.zeros((HIDDEN,), jnp.float32),
            "o_w": norm((HIDDEN, HIDDEN)), "o_b": jnp.zeros((HIDDEN,), jnp.float32),
            "ln1_g": jnp.ones((HIDDEN,), jnp.float32),
            "ln1_b": jnp.zeros((HIDDEN,), jnp.float32),
            "fi_w": norm((HIDDEN, INTERMEDIATE)),
            "fi_b": jnp.zeros((INTERMEDIATE,), jnp.float32),
            "fo_w": norm((INTERMEDIATE, HIDDEN)),
            "fo_b": jnp.zeros((HIDDEN,), jnp.float32),
            "ln2_g": jnp.ones((HIDDEN,), jnp.float32),
            "ln2_b": jnp.zeros((HIDDEN,), jnp.float32),
        })
    return params


def pack_params(params):
    """Fuse QKV (with 1/sqrt(Dh) folded into Q), stack layer weights, pack all
    tiny vectors into one array and all embedding tables into one table."""
    layers = params["layers"]

    def pad_row(v):
        return jnp.pad(v, (0, VEC_W - v.shape[0])).reshape(1, VEC_W)

    rows = [pad_row(params["emb_ln_g"]), pad_row(params["emb_ln_b"])]
    qkv_w, o_w, fi_w, fo_w = [], [], [], []
    for lp in layers:
        qkv_w.append(jnp.concatenate(
            [lp["q_w"] * ATTN_SCALE, lp["k_w"], lp["v_w"]], axis=1))
        o_w.append(lp["o_w"])
        fi_w.append(lp["fi_w"])
        fo_w.append(lp["fo_w"])
        rows += [pad_row(jnp.concatenate([lp["q_b"] * ATTN_SCALE, lp["k_b"], lp["v_b"]])),
                 pad_row(lp["o_b"]),
                 pad_row(lp["ln1_g"]), pad_row(lp["ln1_b"]),
                 pad_row(lp["fi_b"]), pad_row(lp["fo_b"]),
                 pad_row(lp["ln2_g"]), pad_row(lp["ln2_b"])]

    word = jnp.pad(params["word_emb"], ((0, WORD_PAD - VOCAB), (0, 0)))
    typ = jnp.pad(params["type_emb"], ((0, TYPE_PAD - TYPE_VOCAB), (0, 0)))
    emb_table = jnp.concatenate([word, params["pos_emb"], typ], axis=0)  # (128, 32)

    return {
        "emb_table": emb_table,                    # (128, 32)
        "qkv_w": jnp.stack(qkv_w, axis=0),         # (L, H, 3H)
        "o_w": jnp.stack(o_w, axis=0),             # (L, H, H)
        "fi_w": jnp.stack(fi_w, axis=0),           # (L, H, I)
        "fo_w": jnp.stack(fo_w, axis=0),           # (L, I, H)
        "vecs": jnp.concatenate(rows, axis=0),     # (18, 96)
    }


# ---------------- forward pass ----------------
def bert_forward(packed, input_ids, attention_mask, token_type_ids):
    B, S = input_ids.shape
    # only trivial reshapes remain outside the kernel; the gathers, mask math
    # and the [CLS] slice are fused into the single pallas_call below.
    ids = input_ids.reshape(B * S, 1).astype(jnp.int32)
    typ = token_type_ids.reshape(B * S, 1).astype(jnp.int32)
    mask = attention_mask.astype(jnp.float32)                   # (B, S)

    # no grid / no BlockSpecs: every operand is one full-array VMEM block and
    # the whole model runs in a single kernel step (weights ~50 KB << VMEM).
    last_hidden, clip_emb = pl.pallas_call(
        _bert_kernel,
        out_shape=(jax.ShapeDtypeStruct((B, S, HIDDEN), jnp.float32),
                   jax.ShapeDtypeStruct((B, HIDDEN), jnp.float32)),
    )(ids, typ, mask, packed["emb_table"], packed["qkv_w"], packed["o_w"],
      packed["fi_w"], packed["fo_w"], packed["vecs"])

    return {"clip_emb": clip_emb, "time_emb": last_hidden}


if __name__ == "__main__":
    root = jax.random.PRNGKey(0)
    pkey, ikey = jax.random.split(root)

    params = init_params(pkey)
    packed = pack_params(params)

    input_ids = jax.random.randint(ikey, (BATCH, SEQ), 0, VOCAB, dtype=jnp.int32)
    attention_mask = jnp.ones((BATCH, SEQ), jnp.int32)
    token_type_ids = jnp.zeros((BATCH, SEQ), jnp.int32)

    fwd = jax.jit(bert_forward)
    out = fwd(packed, input_ids, attention_mask, token_type_ids)
    jax.block_until_ready(out)

    assert out["clip_emb"].shape == (BATCH, HIDDEN)
    assert out["time_emb"].shape == (BATCH, SEQ, HIDDEN)
    assert bool(jnp.all(jnp.isfinite(out["time_emb"])))
    print("KERNEL_OK")
</pallas_src>

<mosaic_0001>
module attributes {stable_mosaic.version = 11 : i64} {
  func.func @_bert_kernel(%arg0: memref<16x1xi32, #tpu.memory_space<vmem>>, %arg1: memref<16x1xi32, #tpu.memory_space<vmem>>, %arg2: memref<2x8xf32, #tpu.memory_space<vmem>>, %arg3: memref<128x32xf32, #tpu.memory_space<vmem>>, %arg4: memref<2x32x96xf32, #tpu.memory_space<vmem>>, %arg5: memref<2x32x32xf32, #tpu.memory_space<vmem>>, %arg6: memref<2x32x64xf32, #tpu.memory_space<vmem>>, %arg7: memref<2x64x32xf32, #tpu.memory_space<vmem>>, %arg8: memref<18x96xf32, #tpu.memory_space<vmem>>, %arg9: memref<2x8x32xf32, #tpu.memory_space<vmem>>, %arg10: memref<2x32xf32, #tpu.memory_space<vmem>>) attributes {dimension_semantics = [], scalar_prefetch = 0 : i64, scratch_operands = 0 : i64, tpu.core_type = #tpu.core_type<tc>} {
    %c0 = arith.constant 0 : index
    %c0_0 = arith.constant 0 : index
    %0 = vector.load %arg3[%c0, %c0_0] : memref<128x32xf32, #tpu.memory_space<vmem>>, vector<128x32xf32>
    %c0_1 = arith.constant 0 : index
    %c0_2 = arith.constant 0 : index
    %1 = vector.load %arg8[%c0_1, %c0_2] : memref<18x96xf32, #tpu.memory_space<vmem>>, vector<18x96xf32>
    %c0_3 = arith.constant 0 : index
    %c0_4 = arith.constant 0 : index
    %2 = vector.load %arg0[%c0_3, %c0_4] : memref<16x1xi32, #tpu.memory_space<vmem>>, vector<16x1xi32>
    %c0_5 = arith.constant 0 : index
    %c0_6 = arith.constant 0 : index
    %3 = vector.load %arg1[%c0_5, %c0_6] : memref<16x1xi32, #tpu.memory_space<vmem>>, vector<16x1xi32>
    %4 = tpu.iota {dimensions = array<i32: 1>} : vector<16x104xi32>
    %5 = vector.broadcast %2 : vector<16x1xi32> to vector<16x104xi32>
    %6 = arith.cmpi eq, %4, %5 : vector<16x104xi32>
    %7 = arith.extui %6 : vector<16x104xi1> to vector<16x104xi32>
    %8 = arith.sitofp %7 : vector<16x104xi32> to vector<16x104xf32>
    %9 = tpu.iota {dimensions = array<i32: 1>} : vector<16x8xi32>
    %10 = vector.broadcast %3 : vector<16x1xi32> to vector<16x8xi32>
    %11 = arith.cmpi eq, %9, %10 : vector<16x8xi32>
    %12 = arith.extui %11 : vector<16x8xi1> to vector<16x8xi32>
    %13 = arith.sitofp %12 : vector<16x8xi32> to vector<16x8xf32>
    %14 = vector.extract_strided_slice %0 {offsets = [0, 0], sizes = [104, 32], strides = [1, 1]} : vector<128x32xf32> to vector<104x32xf32>
    %cst = arith.constant dense<0.000000e+00> : vector<16x32xf32>
    %15 = tpu.matmul %8, %14, %cst {dimension_numbers = #tpu.dot_dimension_numbers<[1], [0], [0], [1], [0, 0, 1, 1], [], []>} : vector<16x104xf32>, vector<104x32xf32>, vector<16x32xf32> -> vector<16x32xf32>
    %16 = vector.extract_strided_slice %0 {offsets = [120, 0], sizes = [8, 32], strides = [1, 1]} : vector<128x32xf32> to vector<8x32xf32>
    %cst_7 = arith.constant dense<0.000000e+00> : vector<16x32xf32>
    %17 = tpu.matmul %13, %16, %cst_7 {dimension_numbers = #tpu.dot_dimension_numbers<[1], [0], [0], [1], [0, 0, 1, 1], [], []>} : vector<16x8xf32>, vector<8x32xf32>, vector<16x32xf32> -> vector<16x32xf32>
    %18 = arith.addf %15, %17 : vector<16x32xf32>
    %19 = vector.extract_strided_slice %0 {offsets = [104, 0], sizes = [8, 32], strides = [1, 1]} : vector<128x32xf32> to vector<8x32xf32>
    %20 = tpu.concatenate %19, %19 in 0 : vector<8x32xf32>, vector<8x32xf32> -> vector<16x32xf32>
    %21 = arith.addf %18, %20 : vector<16x32xf32>
    %22 = vector.extract_strided_slice %1 {offsets = [0, 0], sizes = [1, 32], strides = [1, 1]} : vector<18x96xf32> to vector<1x32xf32>
    %23 = vector.extract_strided_slice %1 {offsets = [1, 0], sizes = [1, 32], strides = [1, 1]} : vector<18x96xf32> to vector<1x32xf32>
    %cst_8 = arith.constant dense<0.000000e+00> : vector<16xf32>
    %24 = vector.multi_reduction <add>, %21, %cst_8 [1] : vector<16x32xf32> to vector<16xf32>
    %25 = vector.shape_cast %24 : vector<16xf32> to vector<16x1xf32>
    %cst_9 = arith.constant 3.200000e+01 : f32
    %26 = vector.broadcast %cst_9 : f32 to vector<16x1xf32>
    %27 = arith.divf %25, %26 : vector<16x1xf32>
    %28 = vector.broadcast %27 : vector<16x1xf32> to vector<16x32xf32>
    %29 = arith.subf %21, %28 : vector<16x32xf32>
    %30 = arith.mulf %29, %29 : vector<16x32xf32>
    %cst_10 = arith.constant dense<0.000000e+00> : vector<16xf32>
    %31 = vector.multi_reduction <add>, %30, %cst_10 [1] : vector<16x32xf32> to vector<16xf32>
    %32 = vector.shape_cast %31 : vector<16xf32> to vector<16x1xf32>
    %cst_11 = arith.constant 3.200000e+01 : f32
    %33 = vector.broadcast %cst_11 : f32 to vector<16x1xf32>
    %34 = arith.divf %32, %33 : vector<16x1xf32>
    %35 = vector.broadcast %27 : vector<16x1xf32> to vector<16x32xf32>
    %36 = arith.subf %21, %35 : vector<16x32xf32>
    %cst_12 = arith.constant 9.99999996E-13 : f32
    %37 = vector.broadcast %cst_12 : f32 to vector<16x1xf32>
    %38 = arith.addf %34, %37 : vector<16x1xf32>
    %39 = math.rsqrt %38 : vector<16x1xf32>
    %40 = vector.broadcast %39 : vector<16x1xf32> to vector<16x32xf32>
    %41 = arith.mulf %36, %40 : vector<16x32xf32>
    %42 = vector.broadcast %22 : vector<1x32xf32> to vector<16x32xf32>
    %43 = arith.mulf %41, %42 : vector<16x32xf32>
    %44 = vector.broadcast %23 : vector<1x32xf32> to vector<16x32xf32>
    %45 = arith.addf %43, %44 : vector<16x32xf32>
    %c0_13 = arith.constant 0 : index
    %c0_14 = arith.constant 0 : index
    %46 = vector.load %arg2[%c0_13, %c0_14] : memref<2x8xf32, #tpu.memory_space<vmem>>, vector<2x8xf32>
    %cst_15 = arith.constant 1.000000e+00 : f32
    %47 = vector.broadcast %cst_15 : f32 to vector<2x8xf32>
    %48 = arith.subf %47, %46 : vector<2x8xf32>
    %cst_16 = arith.constant -1.000000e+04 : f32
    %49 = vector.broadcast %cst_16 : f32 to vector<2x8xf32>
    %50 = arith.mulf %48, %49 : vector<2x8xf32>
    %51 = vector.extract_strided_slice %50 {offsets = [0, 0], sizes = [1, 8], strides = [1, 1]} : vector<2x8xf32> to vector<1x8xf32>
    %52 = vector.shape_cast %51 : vector<1x8xf32> to vector<1x8xf32>
    %53 = vector.broadcast %52 : vector<1x8xf32> to vector<8x8xf32>
    %54 = vector.extract_strided_slice %50 {offsets = [0, 0], sizes = [1, 8], strides = [1, 1]} : vector<2x8xf32> to vector<1x8xf32>
    %55 = vector.shape_cast %54 : vector<1x8xf32> to vector<1x8xf32>
    %56 = vector.broadcast %55 : vector<1x8xf32> to vector<8x8xf32>
    %57 = vector.extract_strided_slice %50 {offsets = [0, 0], sizes = [1, 8], strides = [1, 1]} : vector<2x8xf32> to vector<1x8xf32>
    %58 = vector.shape_cast %57 : vector<1x8xf32> to vector<1x8xf32>
    %59 = vector.broadcast %58 : vector<1x8xf32> to vector<8x8xf32>
    %60 = vector.extract_strided_slice %50 {offsets = [0, 0], sizes = [1, 8], strides = [1, 1]} : vector<2x8xf32> to vector<1x8xf32>
    %61 = vector.shape_cast %60 : vector<1x8xf32> to vector<1x8xf32>
    %62 = vector.broadcast %61 : vector<1x8xf32> to vector<8x8xf32>
    %63 = vector.extract_strided_slice %50 {offsets = [1, 0], sizes = [1, 8], strides = [1, 1]} : vector<2x8xf32> to vector<1x8xf32>
    %64 = vector.shape_cast %63 : vector<1x8xf32> to vector<1x8xf32>
    %65 = vector.broadcast %64 : vector<1x8xf32> to vector<8x8xf32>
    %66 = vector.extract_strided_slice %50 {offsets = [1, 0], sizes = [1, 8], strides = [1, 1]} : vector<2x8xf32> to vector<1x8xf32>
    %67 = vector.shape_cast %66 : vector<1x8xf32> to vector<1x8xf32>
    %68 = vector.broadcast %67 : vector<1x8xf32> to vector<8x8xf32>
    %69 = vector.extract_strided_slice %50 {offsets = [1, 0], sizes = [1, 8], strides = [1, 1]} : vector<2x8xf32> to vector<1x8xf32>
    %70 = vector.shape_cast %69 : vector<1x8xf32> to vector<1x8xf32>
    %71 = vector.broadcast %70 : vector<1x8xf32> to vector<8x8xf32>
    %72 = vector.extract_strided_slice %50 {offsets = [1, 0], sizes = [1, 8], strides = [1, 1]} : vector<2x8xf32> to vector<1x8xf32>
    %73 = vector.shape_cast %72 : vector<1x8xf32> to vector<1x8xf32>
    %74 = vector.broadcast %73 : vector<1x8xf32> to vector<8x8xf32>
    %75 = tpu.concatenate %53, %56, %59, %62, %65, %68, %71, %74 in 0 : vector<8x8xf32>, vector<8x8xf32>, vector<8x8xf32>, vector<8x8xf32>, vector<8x8xf32>, vector<8x8xf32>, vector<8x8xf32>, vector<8x8xf32> -> vector<64x8xf32>
    %c0_17 = arith.constant 0 : index
    %c0_18 = arith.constant 0 : index
    %c0_19 = arith.constant 0 : index
    %76 = vector.load %arg4[%c0_17, %c0_18, %c0_19] : memref<2x32x96xf32, #tpu.memory_space<vmem>>, vector<1x32x96xf32>
    %77 = vector.shape_cast %76 : vector<1x32x96xf32> to vector<32x96xf32>
    %cst_20 = arith.constant dense<0.000000e+00> : vector<16x96xf32>
    %78 = tpu.matmul %45, %77, %cst_20 {dimension_numbers = #tpu.dot_dimension_numbers<[1], [0], [0], [1], [0, 0, 1, 1], [], []>} : vector<16x32xf32>, vector<32x96xf32>, vector<16x96xf32> -> vector<16x96xf32>
    %79 = vector.extract_strided_slice %1 {offsets = [2, 0], sizes = [1, 96], strides = [1, 1]} : vector<18x96xf32> to vector<1x96xf32>
    %80 = vector.broadcast %79 : vector<1x96xf32> to vector<16x96xf32>
    %81 = arith.addf %78, %80 : vector<16x96xf32>
    %82 = vector.extract_strided_slice %81 {offsets = [0, 0], sizes = [8, 32], strides = [1, 1]} : vector<16x96xf32> to vector<8x32xf32>
    %83 = vector.extract_strided_slice %81 {offsets = [0, 32], sizes = [8, 32], strides = [1, 1]} : vector<16x96xf32> to vector<8x32xf32>
    %84 = vector.extract_strided_slice %82 {offsets = [0, 0], sizes = [8, 8], strides = [1, 1]} : vector<8x32xf32> to vector<8x8xf32>
    %85 = vector.extract_strided_slice %83 {offsets = [0, 0], sizes = [8, 8], strides = [1, 1]} : vector<8x32xf32> to vector<8x8xf32>
    %86 = tpu.transpose %85, [1, 0] : vector<8x8xf32> -> vector<8x8xf32>
    %cst_21 = arith.constant dense<0.000000e+00> : vector<8x8xf32>
    %87 = tpu.matmul %84, %86, %cst_21 {dimension_numbers = #tpu.dot_dimension_numbers<[1], [0], [0], [1], [0, 0, 1, 1], [], []>} : vector<8x8xf32>, vector<8x8xf32>, vector<8x8xf32> -> vector<8x8xf32>
    %88 = vector.extract_strided_slice %82 {offsets = [0, 8], sizes = [8, 8], strides = [1, 1]} : vector<8x32xf32> to vector<8x8xf32>
    %89 = vector.extract_strided_slice %83 {offsets = [0, 8], sizes = [8, 8], strides = [1, 1]} : vector<8x32xf32> to vector<8x8xf32>
    %90 = tpu.transpose %89, [1, 0] : vector<8x8xf32> -> vector<8x8xf32>
    %cst_22 = arith.constant dense<0.000000e+00> : vector<8x8xf32>
    %91 = tpu.matmul %88, %90, %cst_22 {dimension_numbers = #tpu.dot_dimension_numbers<[1], [0], [0], [1], [0, 0, 1, 1], [], []>} : vector<8x8xf32>, vector<8x8xf32>, vector<8x8xf32> -> vector<8x8xf32>
    %92 = vector.extract_strided_slice %82 {offsets = [0, 16], sizes = [8, 8], strides = [1, 1]} : vector<8x32xf32> to vector<8x8xf32>
    %93 = vector.extract_strided_slice %83 {offsets = [0, 16], sizes = [8, 8], strides = [1, 1]} : vector<8x32xf32> to vector<8x8xf32>
    %94 = tpu.transpose %93, [1, 0] : vector<8x8xf32> -> vector<8x8xf32>
    %cst_23 = arith.constant dense<0.000000e+00> : vector<8x8xf32>
    %95 = tpu.matmul %92, %94, %cst_23 {dimension_numbers = #tpu.dot_dimension_numbers<[1], [0], [0], [1], [0, 0, 1, 1], [], []>} : vector<8x8xf32>, vector<8x8xf32>, vector<8x8xf32> -> vector<8x8xf32>
    %96 = vector.extract_strided_slice %82 {offsets = [0, 24], sizes = [8, 8], strides = [1, 1]} : vector<8x32xf32> to vector<8x8xf32>
    %97 = vector.extract_strided_slice %83 {offsets = [0, 24], sizes = [8, 8], strides = [1, 1]} : vector<8x32xf32> to vector<8x8xf32>
    %98 = tpu.transpose %97, [1, 0] : vector<8x8xf32> -> vector<8x8xf32>
    %cst_24 = arith.constant dense<0.000000e+00> : vector<8x8xf32>
    %99 = tpu.matmul %96, %98, %cst_24 {dimension_numbers = #tpu.dot_dimension_numbers<[1], [0], [0], [1], [0, 0, 1, 1], [], []>} : vector<8x8xf32>, vector<8x8xf32>, vector<8x8xf32> -> vector<8x8xf32>
    %100 = vector.extract_strided_slice %81 {offsets = [8, 0], sizes = [8, 32], strides = [1, 1]} : vector<16x96xf32> to vector<8x32xf32>
    %101 = vector.extract_strided_slice %81 {offsets = [8, 32], sizes = [8, 32], strides = [1, 1]} : vector<16x96xf32> to vector<8x32xf32>
    %102 = vector.extract_strided_slice %100 {offsets = [0, 0], sizes = [8, 8], strides = [1, 1]} : vector<8x32xf32> to vector<8x8xf32>
    %103 = vector.extract_strided_slice %101 {offsets = [0, 0], sizes = [8, 8], strides = [1, 1]} : vector<8x32xf32> to vector<8x8xf32>
    %104 = tpu.transpose %103, [1, 0] : vector<8x8xf32> -> vector<8x8xf32>
    %cst_25 = arith.constant dense<0.000000e+00> : vector<8x8xf32>
    %105 = tpu.matmul %102, %104, %cst_25 {dimension_numbers = #tpu.dot_dimension_numbers<[1], [0], [0], [1], [0, 0, 1, 1], [], []>} : vector<8x8xf32>, vector<8x8xf32>, vector<8x8xf32> -> vector<8x8xf32>
    %106 = vector.extract_strided_slice %100 {offsets = [0, 8], sizes = [8, 8], strides = [1, 1]} : vector<8x32xf32> to vector<8x8xf32>
    %107 = vector.extract_strided_slice %101 {offsets = [0, 8], sizes = [8, 8], strides = [1, 1]} : vector<8x32xf32> to vector<8x8xf32>
    %108 = tpu.transpose %107, [1, 0] : vector<8x8xf32> -> vector<8x8xf32>
    %cst_26 = arith.constant dense<0.000000e+00> : vector<8x8xf32>
    %109 = tpu.matmul %106, %108, %cst_26 {dimension_numbers = #tpu.dot_dimension_numbers<[1], [0], [0], [1], [0, 0, 1, 1], [], []>} : vector<8x8xf32>, vector<8x8xf32>, vector<8x8xf32> -> vector<8x8xf32>
    %110 = vector.extract_strided_slice %100 {offsets = [0, 16], sizes = [8, 8], strides = [1, 1]} : vector<8x32xf32> to vector<8x8xf32>
    %111 = vector.extract_strided_slice %101 {offsets = [0, 16], sizes = [8, 8], strides = [1, 1]} : vector<8x32xf32> to vector<8x8xf32>
    %112 = tpu.transpose %111, [1, 0] : vector<8x8xf32> -> vector<8x8xf32>
    %cst_27 = arith.constant dense<0.000000e+00> : vector<8x8xf32>
    %113 = tpu.matmul %110, %112, %cst_27 {dimension_numbers = #tpu.dot_dimension_numbers<[1], [0], [0], [1], [0, 0, 1, 1], [], []>} : vector<8x8xf32>, vector<8x8xf32>, vector<8x8xf32> -> vector<8x8xf32>
    %114 = vector.extract_strided_slice %100 {offsets = [0, 24], sizes = [8, 8], strides = [1, 1]} : vector<8x32xf32> to vector<8x8xf32>
    %115 = vector.extract_strided_slice %101 {offsets = [0, 24], sizes = [8, 8], strides = [1, 1]} : vector<8x32xf32> to vector<8x8xf32>
    %116 = tpu.transpose %115, [1, 0] : vector<8x8xf32> -> vector<8x8xf32>
    %cst_28 = arith.constant dense<0.000000e+00> : vector<8x8xf32>
    %117 = tpu.matmul %114, %116, %cst_28 {dimension_numbers = #tpu.dot_dimension_numbers<[1], [0], [0], [1], [0, 0, 1, 1], [], []>} : vector<8x8xf32>, vector<8x8xf32>, vector<8x8xf32> -> vector<8x8xf32>
    %118 = tpu.concatenate %87, %91, %95, %99, %105, %109, %113, %117 in 0 : vector<8x8xf32>, vector<8x8xf32>, vector<8x8xf32>, vector<8x8xf32>, vector<8x8xf32>, vector<8x8xf32>, vector<8x8xf32>, vector<8x8xf32> -> vector<64x8xf32>
    %119 = arith.addf %118, %75 : vector<64x8xf32>
    %cst_29 = arith.constant dense<0xFF800000> : vector<64xf32>
    %120 = vector.multi_reduction <maximumf>, %119, %cst_29 [1] : vector<64x8xf32> to vector<64xf32>
    %121 = vector.shape_cast %120 : vector<64xf32> to vector<64x1xf32>
    %122 = vector.broadcast %121 : vector<64x1xf32> to vector<64x8xf32>
    %123 = arith.subf %119, %122 : vector<64x8xf32>
    %124 = math.exp %123 : vector<64x8xf32>
    %cst_30 = arith.constant dense<0.000000e+00> : vector<64xf32>
    %125 = vector.multi_reduction <add>, %124, %cst_30 [1] : vector<64x8xf32> to vector<64xf32>
    %126 = vector.shape_cast %125 : vector<64xf32> to vector<64x1xf32>
    %127 = tpu.reciprocal %126 {approx = true} : vector<64x1xf32> -> vector<64x1xf32>
    %128 = vector.broadcast %127 : vector<64x1xf32> to vector<64x8xf32>
    %129 = arith.mulf %124, %128 : vector<64x8xf32>
    %130 = vector.extract_strided_slice %81 {offsets = [0, 64], sizes = [8, 32], strides = [1, 1]} : vector<16x96xf32> to vector<8x32xf32>
    %131 = vector.extract_strided_slice %129 {offsets = [0, 0], sizes = [8, 8], strides = [1, 1]} : vector<64x8xf32> to vector<8x8xf32>
    %132 = vector.extract_strided_slice %130 {offsets = [0, 0], sizes = [8, 8], strides = [1, 1]} : vector<8x32xf32> to vector<8x8xf32>
    %cst_31 = arith.constant dense<0.000000e+00> : vector<8x8xf32>
    %133 = tpu.matmul %131, %132, %cst_31 {dimension_numbers = #tpu.dot_dimension_numbers<[1], [0], [0], [1], [0, 0, 1, 1], [], []>} : vector<8x8xf32>, vector<8x8xf32>, vector<8x8xf32> -> vector<8x8xf32>
    %134 = vector.extract_strided_slice %129 {offsets = [8, 0], sizes = [8, 8], strides = [1, 1]} : vector<64x8xf32> to vector<8x8xf32>
    %135 = vector.extract_strided_slice %130 {offsets = [0, 8], sizes = [8, 8], strides = [1, 1]} : vector<8x32xf32> to vector<8x8xf32>
    %cst_32 = arith.constant dense<0.000000e+00> : vector<8x8xf32>
    %136 = tpu.matmul %134, %135, %cst_32 {dimension_numbers = #tpu.dot_dimension_numbers<[1], [0], [0], [1], [0, 0, 1, 1], [], []>} : vector<8x8xf32>, vector<8x8xf32>, vector<8x8xf32> -> vector<8x8xf32>
    %137 = vector.extract_strided_slice %129 {offsets = [16, 0], sizes = [8, 8], strides = [1, 1]} : vector<64x8xf32> to vector<8x8xf32>
    %138 = vector.extract_strided_slice %130 {offsets = [0, 16], sizes = [8, 8], strides = [1, 1]} : vector<8x32xf32> to vector<8x8xf32>
    %cst_33 = arith.constant dense<0.000000e+00> : vector<8x8xf32>
    %139 = tpu.matmul %137, %138, %cst_33 {dimension_numbers = #tpu.dot_dimension_numbers<[1], [0], [0], [1], [0, 0, 1, 1], [], []>} : vector<8x8xf32>, vector<8x8xf32>, vector<8x8xf32> -> vector<8x8xf32>
    %140 = vector.extract_strided_slice %129 {offsets = [24, 0], sizes = [8, 8], strides = [1, 1]} : vector<64x8xf32> to vector<8x8xf32>
    %141 = vector.extract_strided_slice %130 {offsets = [0, 24], sizes = [8, 8], strides = [1, 1]} : vector<8x32xf32> to vector<8x8xf32>
    %cst_34 = arith.constant dense<0.000000e+00> : vector<8x8xf32>
    %142 = tpu.matmul %140, %141, %cst_34 {dimension_numbers = #tpu.dot_dimension_numbers<[1], [0], [0], [1], [0, 0, 1, 1], [], []>} : vector<8x8xf32>, vector<8x8xf32>, vector<8x8xf32> -> vector<8x8xf32>
    %143 = tpu.concatenate %133, %136, %139, %142 in 1 : vector<8x8xf32>, vector<8x8xf32>, vector<8x8xf32>, vector<8x8xf32> -> vector<8x32xf32>
    %144 = vector.extract_strided_slice %81 {offsets = [8, 64], sizes = [8, 32], strides = [1, 1]} : vector<16x96xf32> to vector<8x32xf32>
    %145 = vector.extract_strided_slice %129 {offsets = [32, 0], sizes = [8, 8], strides = [1, 1]} : vector<64x8xf32> to vector<8x8xf32>
    %146 = vector.extract_strided_slice %144 {offsets = [0, 0], sizes = [8, 8], strides = [1, 1]} : vector<8x32xf32> to vector<8x8xf32>
    %cst_35 = arith.constant dense<0.000000e+00> : vector<8x8xf32>
    %147 = tpu.matmul %145, %146, %cst_35 {dimension_numbers = #tpu.dot_dimension_numbers<[1], [0], [0], [1], [0, 0, 1, 1], [], []>} : vector<8x8xf32>, vector<8x8xf32>, vector<8x8xf32> -> vector<8x8xf32>
    %148 = vector.extract_strided_slice %129 {offsets = [40, 0], sizes = [8, 8], strides = [1, 1]} : vector<64x8xf32> to vector<8x8xf32>
    %149 = vector.extract_strided_slice %144 {offsets = [0, 8], sizes = [8, 8], strides = [1, 1]} : vector<8x32xf32> to vector<8x8xf32>
    %cst_36 = arith.constant dense<0.000000e+00> : vector<8x8xf32>
    %150 = tpu.matmul %148, %149, %cst_36 {dimension_numbers = #tpu.dot_dimension_numbers<[1], [0], [0], [1], [0, 0, 1, 1], [], []>} : vector<8x8xf32>, vector<8x8xf32>, vector<8x8xf32> -> vector<8x8xf32>
    %151 = vector.extract_strided_slice %129 {offsets = [48, 0], sizes = [8, 8], strides = [1, 1]} : vector<64x8xf32> to vector<8x8xf32>
    %152 = vector.extract_strided_slice %144 {offsets = [0, 16], sizes = [8, 8], strides = [1, 1]} : vector<8x32xf32> to vector<8x8xf32>
    %cst_37 = arith.constant dense<0.000000e+00> : vector<8x8xf32>
    %153 = tpu.matmul %151, %152, %cst_37 {dimension_numbers = #tpu.dot_dimension_numbers<[1], [0], [0], [1], [0, 0, 1, 1], [], []>} : vector<8x8xf32>, vector<8x8xf32>, vector<8x8xf32> -> vector<8x8xf32>
    %154 = vector.extract_strided_slice %129 {offsets = [56, 0], sizes = [8, 8], strides = [1, 1]} : vector<64x8xf32> to vector<8x8xf32>
    %155 = vector.extract_strided_slice %144 {offsets = [0, 24], sizes = [8, 8], strides = [1, 1]} : vector<8x32xf32> to vector<8x8xf32>
    %cst_38 = arith.constant dense<0.000000e+00> : vector<8x8xf32>
    %156 = tpu.matmul %154, %155, %cst_38 {dimension_numbers = #tpu.dot_dimension_numbers<[1], [0], [0], [1], [0, 0, 1, 1], [], []>} : vector<8x8xf32>, vector<8x8xf32>, vector<8x8xf32> -> vector<8x8xf32>
    %157 = tpu.concatenate %147, %150, %153, %156 in 1 : vector<8x8xf32>, vector<8x8xf32>, vector<8x8xf32>, vector<8x8xf32> -> vector<8x32xf32>
    %158 = tpu.concatenate %143, %157 in 0 : vector<8x32xf32>, vector<8x32xf32> -> vector<16x32xf32>
    %c0_39 = arith.constant 0 : index
    %c0_40 = arith.constant 0 : index
    %c0_41 = arith.constant 0 : index
    %159 = vector.load %arg5[%c0_39, %c0_40, %c0_41] : memref<2x32x32xf32, #tpu.memory_space<vmem>>, vector<1x32x32xf32>
    %160 = vector.shape_cast %159 : vector<1x32x32xf32> to vector<32x32xf32>
    %cst_42 = arith.constant dense<0.000000e+00> : vector<16x32xf32>
    %161 = tpu.matmul %158, %160, %cst_42 {dimension_numbers = #tpu.dot_dimension_numbers<[1], [0], [0], [1], [0, 0, 1, 1], [], []>} : vector<16x32xf32>, vector<32x32xf32>, vector<16x32xf32> -> vector<16x32xf32>
    %162 = vector.extract_strided_slice %1 {offsets = [3, 0], sizes = [1, 32], strides = [1, 1]} : vector<18x96xf32> to vector<1x32xf32>
    %163 = vector.broadcast %162 : vector<1x32xf32> to vector<16x32xf32>
    %164 = arith.addf %161, %163 : vector<16x32xf32>
    %165 = arith.addf %164, %45 : vector<16x32xf32>
    %166 = vector.extract_strided_slice %1 {offsets = [4, 0], sizes = [1, 32], strides = [1, 1]} : vector<18x96xf32> to vector<1x32xf32>
    %167 = vector.extract_strided_slice %1 {offsets = [5, 0], sizes = [1, 32], strides = [1, 1]} : vector<18x96xf32> to vector<1x32xf32>
    %cst_43 = arith.constant dense<0.000000e+00> : vector<16xf32>
    %168 = vector.multi_reduction <add>, %165, %cst_43 [1] : vector<16x32xf32> to vector<16xf32>
    %169 = vector.shape_cast %168 : vector<16xf32> to vector<16x1xf32>
    %cst_44 = arith.constant 3.200000e+01 : f32
    %170 = vector.broadcast %cst_44 : f32 to vector<16x1xf32>
    %171 = arith.divf %169, %170 : vector<16x1xf32>
    %172 = vector.broadcast %171 : vector<16x1xf32> to vector<16x32xf32>
    %173 = arith.subf %165, %172 : vector<16x32xf32>
    %174 = arith.mulf %173, %173 : vector<16x32xf32>
    %cst_45 = arith.constant dense<0.000000e+00> : vector<16xf32>
    %175 = vector.multi_reduction <add>, %174, %cst_45 [1] : vector<16x32xf32> to vector<16xf32>
    %176 = vector.shape_cast %175 : vector<16xf32> to vector<16x1xf32>
    %cst_46 = arith.constant 3.200000e+01 : f32
    %177 = vector.broadcast %cst_46 : f32 to vector<16x1xf32>
    %178 = arith.divf %176, %177 : vector<16x1xf32>
    %179 = vector.broadcast %171 : vector<16x1xf32> to vector<16x32xf32>
    %180 = arith.subf %165, %179 : vector<16x32xf32>
    %cst_47 = arith.constant 9.99999996E-13 : f32
    %181 = vector.broadcast %cst_47 : f32 to vector<16x1xf32>
    %182 = arith.addf %178, %181 : vector<16x1xf32>
    %183 = math.rsqrt %182 : vector<16x1xf32>
    %184 = vector.broadcast %183 : vector<16x1xf32> to vector<16x32xf32>
    %185 = arith.mulf %180, %184 : vector<16x32xf32>
    %186 = vector.broadcast %166 : vector<1x32xf32> to vector<16x32xf32>
    %187 = arith.mulf %185, %186 : vector<16x32xf32>
    %188 = vector.broadcast %167 : vector<1x32xf32> to vector<16x32xf32>
    %189 = arith.addf %187, %188 : vector<16x32xf32>
    %c0_48 = arith.constant 0 : index
    %c0_49 = arith.constant 0 : index
    %c0_50 = arith.constant 0 : index
    %190 = vector.load %arg6[%c0_48, %c0_49, %c0_50] : memref<2x32x64xf32, #tpu.memory_space<vmem>>, vector<1x32x64xf32>
    %191 = vector.shape_cast %190 : vector<1x32x64xf32> to vector<32x64xf32>
    %cst_51 = arith.constant dense<0.000000e+00> : vector<16x64xf32>
    %192 = tpu.matmul %189, %191, %cst_51 {dimension_numbers = #tpu.dot_dimension_numbers<[1], [0], [0], [1], [0, 0, 1, 1], [], []>} : vector<16x32xf32>, vector<32x64xf32>, vector<16x64xf32> -> vector<16x64xf32>
    %193 = vector.extract_strided_slice %1 {offsets = [6, 0], sizes = [1, 64], strides = [1, 1]} : vector<18x96xf32> to vector<1x64xf32>
    %194 = vector.broadcast %193 : vector<1x64xf32> to vector<16x64xf32>
    %195 = arith.addf %192, %194 : vector<16x64xf32>
    %cst_52 = arith.constant 5.000000e-01 : f32
    %196 = vector.broadcast %cst_52 : f32 to vector<16x64xf32>
    %197 = arith.mulf %196, %195 : vector<16x64xf32>
    %cst_53 = arith.constant 0.707106769 : f32
    %198 = vector.broadcast %cst_53 : f32 to vector<16x64xf32>
    %199 = arith.mulf %195, %198 : vector<16x64xf32>
    %200 = math.erf %199 : vector<16x64xf32>
    %cst_54 = arith.constant 1.000000e+00 : f32
    %201 = vector.broadcast %cst_54 : f32 to vector<16x64xf32>
    %202 = arith.addf %201, %200 : vector<16x64xf32>
    %203 = arith.mulf %197, %202 : vector<16x64xf32>
    %c0_55 = arith.constant 0 : index
    %c0_56 = arith.constant 0 : index
    %c0_57 = arith.constant 0 : index
    %204 = vector.load %arg7[%c0_55, %c0_56, %c0_57] : memref<2x64x32xf32, #tpu.memory_space<vmem>>, vector<1x64x32xf32>
    %205 = vector.shape_cast %204 : vector<1x64x32xf32> to vector<64x32xf32>
    %cst_58 = arith.constant dense<0.000000e+00> : vector<16x32xf32>
    %206 = tpu.matmul %203, %205, %cst_58 {dimension_numbers = #tpu.dot_dimension_numbers<[1], [0], [0], [1], [0, 0, 1, 1], [], []>} : vector<16x64xf32>, vector<64x32xf32>, vector<16x32xf32> -> vector<16x32xf32>
    %207 = vector.extract_strided_slice %1 {offsets = [7, 0], sizes = [1, 32], strides = [1, 1]} : vector<18x96xf32> to vector<1x32xf32>
    %208 = vector.broadcast %207 : vector<1x32xf32> to vector<16x32xf32>
    %209 = arith.addf %206, %208 : vector<16x32xf32>
    %210 = arith.addf %209, %189 : vector<16x32xf32>
    %211 = vector.extract_strided_slice %1 {offsets = [8, 0], sizes = [1, 32], strides = [1, 1]} : vector<18x96xf32> to vector<1x32xf32>
    %212 = vector.extract_strided_slice %1 {offsets = [9, 0], sizes = [1, 32], strides = [1, 1]} : vector<18x96xf32> to vector<1x32xf32>
    %cst_59 = arith.constant dense<0.000000e+00> : vector<16xf32>
    %213 = vector.multi_reduction <add>, %210, %cst_59 [1] : vector<16x32xf32> to vector<16xf32>
    %214 = vector.shape_cast %213 : vector<16xf32> to vector<16x1xf32>
    %cst_60 = arith.constant 3.200000e+01 : f32
    %215 = vector.broadcast %cst_60 : f32 to vector<16x1xf32>
    %216 = arith.divf %214, %215 : vector<16x1xf32>
    %217 = vector.broadcast %216 : vector<16x1xf32> to vector<16x32xf32>
    %218 = arith.subf %210, %217 : vector<16x32xf32>
    %219 = arith.mulf %218, %218 : vector<16x32xf32>
    %cst_61 = arith.constant dense<0.000000e+00> : vector<16xf32>
    %220 = vector.multi_reduction <add>, %219, %cst_61 [1] : vector<16x32xf32> to vector<16xf32>
    %221 = vector.shape_cast %220 : vector<16xf32> to vector<16x1xf32>
    %cst_62 = arith.constant 3.200000e+01 : f32
    %222 = vector.broadcast %cst_62 : f32 to vector<16x1xf32>
    %223 = arith.divf %221, %222 : vector<16x1xf32>
    %224 = vector.broadcast %216 : vector<16x1xf32> to vector<16x32xf32>
    %225 = arith.subf %210, %224 : vector<16x32xf32>
    %cst_63 = arith.constant 9.99999996E-13 : f32
    %226 = vector.broadcast %cst_63 : f32 to vector<16x1xf32>
    %227 = arith.addf %223, %226 : vector<16x1xf32>
    %228 = math.rsqrt %227 : vector<16x1xf32>
    %229 = vector.broadcast %228 : vector<16x1xf32> to vector<16x32xf32>
    %230 = arith.mulf %225, %229 : vector<16x32xf32>
    %231 = vector.broadcast %211 : vector<1x32xf32> to vector<16x32xf32>
    %232 = arith.mulf %230, %231 : vector<16x32xf32>
    %233 = vector.broadcast %212 : vector<1x32xf32> to vector<16x32xf32>
    %234 = arith.addf %232, %233 : vector<16x32xf32>
    %c1 = arith.constant 1 : index
    %c0_64 = arith.constant 0 : index
    %c0_65 = arith.constant 0 : index
    %235 = vector.load %arg4[%c1, %c0_64, %c0_65] : memref<2x32x96xf32, #tpu.memory_space<vmem>>, vector<1x32x96xf32>
    %236 = vector.shape_cast %235 : vector<1x32x96xf32> to vector<32x96xf32>
    %cst_66 = arith.constant dense<0.000000e+00> : vector<16x96xf32>
    %237 = tpu.matmul %234, %236, %cst_66 {dimension_numbers = #tpu.dot_dimension_numbers<[1], [0], [0], [1], [0, 0, 1, 1], [], []>} : vector<16x32xf32>, vector<32x96xf32>, vector<16x96xf32> -> vector<16x96xf32>
    %238 = vector.extract_strided_slice %1 {offsets = [10, 0], sizes = [1, 96], strides = [1, 1]} : vector<18x96xf32> to vector<1x96xf32>
    %239 = vector.broadcast %238 : vector<1x96xf32> to vector<16x96xf32>
    %240 = arith.addf %237, %239 : vector<16x96xf32>
    %241 = vector.extract_strided_slice %240 {offsets = [0, 0], sizes = [8, 32], strides = [1, 1]} : vector<16x96xf32> to vector<8x32xf32>
    %242 = vector.extract_strided_slice %240 {offsets = [0, 32], sizes = [8, 32], strides = [1, 1]} : vector<16x96xf32> to vector<8x32xf32>
    %243 = vector.extract_strided_slice %241 {offsets = [0, 0], sizes = [8, 8], strides = [1, 1]} : vector<8x32xf32> to vector<8x8xf32>
    %244 = vector.extract_strided_slice %242 {offsets = [0, 0], sizes = [8, 8], strides = [1, 1]} : vector<8x32xf32> to vector<8x8xf32>
    %245 = tpu.transpose %244, [1, 0] : vector<8x8xf32> -> vector<8x8xf32>
    %cst_67 = arith.constant dense<0.000000e+00> : vector<8x8xf32>
    %246 = tpu.matmul %243, %245, %cst_67 {dimension_numbers = #tpu.dot_dimension_numbers<[1], [0], [0], [1], [0, 0, 1, 1], [], []>} : vector<8x8xf32>, vector<8x8xf32>, vector<8x8xf32> -> vector<8x8xf32>
    %247 = vector.extract_strided_slice %241 {offsets = [0, 8], sizes = [8, 8], strides = [1, 1]} : vector<8x32xf32> to vector<8x8xf32>
    %248 = vector.extract_strided_slice %242 {offsets = [0, 8], sizes = [8, 8], strides = [1, 1]} : vector<8x32xf32> to vector<8x8xf32>
    %249 = tpu.transpose %248, [1, 0] : vector<8x8xf32> -> vector<8x8xf32>
    %cst_68 = arith.constant dense<0.000000e+00> : vector<8x8xf32>
    %250 = tpu.matmul %247, %249, %cst_68 {dimension_numbers = #tpu.dot_dimension_numbers<[1], [0], [0], [1], [0, 0, 1, 1], [], []>} : vector<8x8xf32>, vector<8x8xf32>, vector<8x8xf32> -> vector<8x8xf32>
    %251 = vector.extract_strided_slice %241 {offsets = [0, 16], sizes = [8, 8], strides = [1, 1]} : vector<8x32xf32> to vector<8x8xf32>
    %252 = vector.extract_strided_slice %242 {offsets = [0, 16], sizes = [8, 8], strides = [1, 1]} : vector<8x32xf32> to vector<8x8xf32>
    %253 = tpu.transpose %252, [1, 0] : vector<8x8xf32> -> vector<8x8xf32>
    %cst_69 = arith.constant dense<0.000000e+00> : vector<8x8xf32>
    %254 = tpu.matmul %251, %253, %cst_69 {dimension_numbers = #tpu.dot_dimension_numbers<[1], [0], [0], [1], [0, 0, 1, 1], [], []>} : vector<8x8xf32>, vector<8x8xf32>, vector<8x8xf32> -> vector<8x8xf32>
    %255 = vector.extract_strided_slice %241 {offsets = [0, 24], sizes = [8, 8], strides = [1, 1]} : vector<8x32xf32> to vector<8x8xf32>
    %256 = vector.extract_strided_slice %242 {offsets = [0, 24], sizes = [8, 8], strides = [1, 1]} : vector<8x32xf32> to vector<8x8xf32>
    %257 = tpu.transpose %256, [1, 0] : vector<8x8xf32> -> vector<8x8xf32>
    %cst_70 = arith.constant dense<0.000000e+00> : vector<8x8xf32>
    %258 = tpu.matmul %255, %257, %cst_70 {dimension_numbers = #tpu.dot_dimension_numbers<[1], [0], [0], [1], [0, 0, 1, 1], [], []>} : vector<8x8xf32>, vector<8x8xf32>, vector<8x8xf32> -> vector<8x8xf32>
    %259 = vector.extract_strided_slice %240 {offsets = [8, 0], sizes = [8, 32], strides = [1, 1]} : vector<16x96xf32> to vector<8x32xf32>
    %260 = vector.extract_strided_slice %240 {offsets = [8, 32], sizes = [8, 32], strides = [1, 1]} : vector<16x96xf32> to vector<8x32xf32>
    %261 = vector.extract_strided_slice %259 {offsets = [0, 0], sizes = [8, 8], strides = [1, 1]} : vector<8x32xf32> to vector<8x8xf32>
    %262 = vector.extract_strided_slice %260 {offsets = [0, 0], sizes = [8, 8], strides = [1, 1]} : vector<8x32xf32> to vector<8x8xf32>
    %263 = tpu.transpose %262, [1, 0] : vector<8x8xf32> -> vector<8x8xf32>
    %cst_71 = arith.constant dense<0.000000e+00> : vector<8x8xf32>
    %264 = tpu.matmul %261, %263, %cst_71 {dimension_numbers = #tpu.dot_dimension_numbers<[1], [0], [0], [1], [0, 0, 1, 1], [], []>} : vector<8x8xf32>, vector<8x8xf32>, vector<8x8xf32> -> vector<8x8xf32>
    %265 = vector.extract_strided_slice %259 {offsets = [0, 8], sizes = [8, 8], strides = [1, 1]} : vector<8x32xf32> to vector<8x8xf32>
    %266 = vector.extract_strided_slice %260 {offsets = [0, 8], sizes = [8, 8], strides = [1, 1]} : vector<8x32xf32> to vector<8x8xf32>
    %267 = tpu.transpose %266, [1, 0] : vector<8x8xf32> -> vector<8x8xf32>
    %cst_72 = arith.constant dense<0.000000e+00> : vector<8x8xf32>
    %268 = tpu.matmul %265, %267, %cst_72 {dimension_numbers = #tpu.dot_dimension_numbers<[1], [0], [0], [1], [0, 0, 1, 1], [], []>} : vector<8x8xf32>, vector<8x8xf32>, vector<8x8xf32> -> vector<8x8xf32>
    %269 = vector.extract_strided_slice %259 {offsets = [0, 16], sizes = [8, 8], strides = [1, 1]} : vector<8x32xf32> to vector<8x8xf32>
    %270 = vector.extract_strided_slice %260 {offsets = [0, 16], sizes = [8, 8], strides = [1, 1]} : vector<8x32xf32> to vector<8x8xf32>
    %271 = tpu.transpose %270, [1, 0] : vector<8x8xf32> -> vector<8x8xf32>
    %cst_73 = arith.constant dense<0.000000e+00> : vector<8x8xf32>
    %272 = tpu.matmul %269, %271, %cst_73 {dimension_numbers = #tpu.dot_dimension_numbers<[1], [0], [0], [1], [0, 0, 1, 1], [], []>} : vector<8x8xf32>, vector<8x8xf32>, vector<8x8xf32> -> vector<8x8xf32>
    %273 = vector.extract_strided_slice %259 {offsets = [0, 24], sizes = [8, 8], strides = [1, 1]} : vector<8x32xf32> to vector<8x8xf32>
    %274 = vector.extract_strided_slice %260 {offsets = [0, 24], sizes = [8, 8], strides = [1, 1]} : vector<8x32xf32> to vector<8x8xf32>
    %275 = tpu.transpose %274, [1, 0] : vector<8x8xf32> -> vector<8x8xf32>
    %cst_74 = arith.constant dense<0.000000e+00> : vector<8x8xf32>
    %276 = tpu.matmul %273, %275, %cst_74 {dimension_numbers = #tpu.dot_dimension_numbers<[1], [0], [0], [1], [0, 0, 1, 1], [], []>} : vector<8x8xf32>, vector<8x8xf32>, vector<8x8xf32> -> vector<8x8xf32>
    %277 = tpu.concatenate %246, %250, %254, %258, %264, %268, %272, %276 in 0 : vector<8x8xf32>, vector<8x8xf32>, vector<8x8xf32>, vector<8x8xf32>, vector<8x8xf32>, vector<8x8xf32>, vector<8x8xf32>, vector<8x8xf32> -> vector<64x8xf32>
    %278 = arith.addf %277, %75 : vector<64x8xf32>
    %cst_75 = arith.constant dense<0xFF800000> : vector<64xf32>
    %279 = vector.multi_reduction <maximumf>, %278, %cst_75 [1] : vector<64x8xf32> to vector<64xf32>
    %280 = vector.shape_cast %279 : vector<64xf32> to vector<64x1xf32>
    %281 = vector.broadcast %280 : vector<64x1xf32> to vector<64x8xf32>
    %282 = arith.subf %278, %281 : vector<64x8xf32>
    %283 = math.exp %282 : vector<64x8xf32>
    %cst_76 = arith.constant dense<0.000000e+00> : vector<64xf32>
    %284 = vector.multi_reduction <add>, %283, %cst_76 [1] : vector<64x8xf32> to vector<64xf32>
    %285 = vector.shape_cast %284 : vector<64xf32> to vector<64x1xf32>
    %286 = tpu.reciprocal %285 {approx = true} : vector<64x1xf32> -> vector<64x1xf32>
    %287 = vector.broadcast %286 : vector<64x1xf32> to vector<64x8xf32>
    %288 = arith.mulf %283, %287 : vector<64x8xf32>
    %289 = vector.extract_strided_slice %240 {offsets = [0, 64], sizes = [8, 32], strides = [1, 1]} : vector<16x96xf32> to vector<8x32xf32>
    %290 = vector.extract_strided_slice %288 {offsets = [0, 0], sizes = [8, 8], strides = [1, 1]} : vector<64x8xf32> to vector<8x8xf32>
    %291 = vector.extract_strided_slice %289 {offsets = [0, 0], sizes = [8, 8], strides = [1, 1]} : vector<8x32xf32> to vector<8x8xf32>
    %cst_77 = arith.constant dense<0.000000e+00> : vector<8x8xf32>
    %292 = tpu.matmul %290, %291, %cst_77 {dimension_numbers = #tpu.dot_dimension_numbers<[1], [0], [0], [1], [0, 0, 1, 1], [], []>} : vector<8x8xf32>, vector<8x8xf32>, vector<8x8xf32> -> vector<8x8xf32>
    %293 = vector.extract_strided_slice %288 {offsets = [8, 0], sizes = [8, 8], strides = [1, 1]} : vector<64x8xf32> to vector<8x8xf32>
    %294 = vector.extract_strided_slice %289 {offsets = [0, 8], sizes = [8, 8], strides = [1, 1]} : vector<8x32xf32> to vector<8x8xf32>
    %cst_78 = arith.constant dense<0.000000e+00> : vector<8x8xf32>
    %295 = tpu.matmul %293, %294, %cst_78 {dimension_numbers = #tpu.dot_dimension_numbers<[1], [0], [0], [1], [0, 0, 1, 1], [], []>} : vector<8x8xf32>, vector<8x8xf32>, vector<8x8xf32> -> vector<8x8xf32>
    %296 = vector.extract_strided_slice %288 {offsets = [16, 0], sizes = [8, 8], strides = [1, 1]} : vector<64x8xf32> to vector<8x8xf32>
    %297 = vector.extract_strided_slice %289 {offsets = [0, 16], sizes = [8, 8], strides = [1, 1]} : vector<8x32xf32> to vector<8x8xf32>
    %cst_79 = arith.constant dense<0.000000e+00> : vector<8x8xf32>
    %298 = tpu.matmul %296, %297, %cst_79 {dimension_numbers = #tpu.dot_dimension_numbers<[1], [0], [0], [1], [0, 0, 1, 1], [], []>} : vector<8x8xf32>, vector<8x8xf32>, vector<8x8xf32> -> vector<8x8xf32>
    %299 = vector.extract_strided_slice %288 {offsets = [24, 0], sizes = [8, 8], strides = [1, 1]} : vector<64x8xf32> to vector<8x8xf32>
    %300 = vector.extract_strided_slice %289 {offsets = [0, 24], sizes = [8, 8], strides = [1, 1]} : vector<8x32xf32> to vector<8x8xf32>
    %cst_80 = arith.constant dense<0.000000e+00> : vector<8x8xf32>
    %301 = tpu.matmul %299, %300, %cst_80 {dimension_numbers = #tpu.dot_dimension_numbers<[1], [0], [0], [1], [0, 0, 1, 1], [], []>} : vector<8x8xf32>, vector<8x8xf32>, vector<8x8xf32> -> vector<8x8xf32>
    %302 = tpu.concatenate %292, %295, %298, %301 in 1 : vector<8x8xf32>, vector<8x8xf32>, vector<8x8xf32>, vector<8x8xf32> -> vector<8x32xf32>
    %303 = vector.extract_strided_slice %240 {offsets = [8, 64], sizes = [8, 32], strides = [1, 1]} : vector<16x96xf32> to vector<8x32xf32>
    %304 = vector.extract_strided_slice %288 {offsets = [32, 0], sizes = [8, 8], strides = [1, 1]} : vector<64x8xf32> to vector<8x8xf32>
    %305 = vector.extract_strided_slice %303 {offsets = [0, 0], sizes = [8, 8], strides = [1, 1]} : vector<8x32xf32> to vector<8x8xf32>
    %cst_81 = arith.constant dense<0.000000e+00> : vector<8x8xf32>
    %306 = tpu.matmul %304, %305, %cst_81 {dimension_numbers = #tpu.dot_dimension_numbers<[1], [0], [0], [1], [0, 0, 1, 1], [], []>} : vector<8x8xf32>, vector<8x8xf32>, vector<8x8xf32> -> vector<8x8xf32>
    %307 = vector.extract_strided_slice %288 {offsets = [40, 0], sizes = [8, 8], strides = [1, 1]} : vector<64x8xf32> to vector<8x8xf32>
    %308 = vector.extract_strided_slice %303 {offsets = [0, 8], sizes = [8, 8], strides = [1, 1]} : vector<8x32xf32> to vector<8x8xf32>
    %cst_82 = arith.constant dense<0.000000e+00> : vector<8x8xf32>
    %309 = tpu.matmul %307, %308, %cst_82 {dimension_numbers = #tpu.dot_dimension_numbers<[1], [0], [0], [1], [0, 0, 1, 1], [], []>} : vector<8x8xf32>, vector<8x8xf32>, vector<8x8xf32> -> vector<8x8xf32>
    %310 = vector.extract_strided_slice %288 {offsets = [48, 0], sizes = [8, 8], strides = [1, 1]} : vector<64x8xf32> to vector<8x8xf32>
    %311 = vector.extract_strided_slice %303 {offsets = [0, 16], sizes = [8, 8], strides = [1, 1]} : vector<8x32xf32> to vector<8x8xf32>
    %cst_83 = arith.constant dense<0.000000e+00> : vector<8x8xf32>
    %312 = tpu.matmul %310, %311, %cst_83 {dimension_numbers = #tpu.dot_dimension_numbers<[1], [0], [0], [1], [0, 0, 1, 1], [], []>} : vector<8x8xf32>, vector<8x8xf32>, vector<8x8xf32> -> vector<8x8xf32>
    %313 = vector.extract_strided_slice %288 {offsets = [56, 0], sizes = [8, 8], strides = [1, 1]} : vector<64x8xf32> to vector<8x8xf32>
    %314 = vector.extract_strided_slice %303 {offsets = [0, 24], sizes = [8, 8], strides = [1, 1]} : vector<8x32xf32> to vector<8x8xf32>
    %cst_84 = arith.constant dense<0.000000e+00> : vector<8x8xf32>
    %315 = tpu.matmul %313, %314, %cst_84 {dimension_numbers = #tpu.dot_dimension_numbers<[1], [0], [0], [1], [0, 0, 1, 1], [], []>} : vector<8x8xf32>, vector<8x8xf32>, vector<8x8xf32> -> vector<8x8xf32>
    %316 = tpu.concatenate %306, %309, %312, %315 in 1 : vector<8x8xf32>, vector<8x8xf32>, vector<8x8xf32>, vector<8x8xf32> -> vector<8x32xf32>
    %317 = tpu.concatenate %302, %316 in 0 : vector<8x32xf32>, vector<8x32xf32> -> vector<16x32xf32>
    %c1_85 = arith.constant 1 : index
    %c0_86 = arith.constant 0 : index
    %c0_87 = arith.constant 0 : index
    %318 = vector.load %arg5[%c1_85, %c0_86, %c0_87] : memref<2x32x32xf32, #tpu.memory_space<vmem>>, vector<1x32x32xf32>
    %319 = vector.shape_cast %318 : vector<1x32x32xf32> to vector<32x32xf32>
    %cst_88 = arith.constant dense<0.000000e+00> : vector<16x32xf32>
    %320 = tpu.matmul %317, %319, %cst_88 {dimension_numbers = #tpu.dot_dimension_numbers<[1], [0], [0], [1], [0, 0, 1, 1], [], []>} : vector<16x32xf32>, vector<32x32xf32>, vector<16x32xf32> -> vector<16x32xf32>
    %321 = vector.extract_strided_slice %1 {offsets = [11, 0], sizes = [1, 32], strides = [1, 1]} : vector<18x96xf32> to vector<1x32xf32>
    %322 = vector.broadcast %321 : vector<1x32xf32> to vector<16x32xf32>
    %323 = arith.addf %320, %322 : vector<16x32xf32>
    %324 = arith.addf %323, %234 : vector<16x32xf32>
    %325 = vector.extract_strided_slice %1 {offsets = [12, 0], sizes = [1, 32], strides = [1, 1]} : vector<18x96xf32> to vector<1x32xf32>
    %326 = vector.extract_strided_slice %1 {offsets = [13, 0], sizes = [1, 32], strides = [1, 1]} : vector<18x96xf32> to vector<1x32xf32>
    %cst_89 = arith.constant dense<0.000000e+00> : vector<16xf32>
    %327 = vector.multi_reduction <add>, %324, %cst_89 [1] : vector<16x32xf32> to vector<16xf32>
    %328 = vector.shape_cast %327 : vector<16xf32> to vector<16x1xf32>
    %cst_90 = arith.constant 3.200000e+01 : f32
    %329 = vector.broadcast %cst_90 : f32 to vector<16x1xf32>
    %330 = arith.divf %328, %329 : vector<16x1xf32>
    %331 = vector.broadcast %330 : vector<16x1xf32> to vector<16x32xf32>
    %332 = arith.subf %324, %331 : vector<16x32xf32>
    %333 = arith.mulf %332, %332 : vector<16x32xf32>
    %cst_91 = arith.constant dense<0.000000e+00> : vector<16xf32>
    %334 = vector.multi_reduction <add>, %333, %cst_91 [1] : vector<16x32xf32> to vector<16xf32>
    %335 = vector.shape_cast %334 : vector<16xf32> to vector<16x1xf32>
    %cst_92 = arith.constant 3.200000e+01 : f32
    %336 = vector.broadcast %cst_92 : f32 to vector<16x1xf32>
    %337 = arith.divf %335, %336 : vector<16x1xf32>
    %338 = vector.broadcast %330 : vector<16x1xf32> to vector<16x32xf32>
    %339 = arith.subf %324, %338 : vector<16x32xf32>
    %cst_93 = arith.constant 9.99999996E-13 : f32
    %340 = vector.broadcast %cst_93 : f32 to vector<16x1xf32>
    %341 = arith.addf %337, %340 : vector<16x1xf32>
    %342 = math.rsqrt %341 : vector<16x1xf32>
    %343 = vector.broadcast %342 : vector<16x1xf32> to vector<16x32xf32>
    %344 = arith.mulf %339, %343 : vector<16x32xf32>
    %345 = vector.broadcast %325 : vector<1x32xf32> to vector<16x32xf32>
    %346 = arith.mulf %344, %345 : vector<16x32xf32>
    %347 = vector.broadcast %326 : vector<1x32xf32> to vector<16x32xf32>
    %348 = arith.addf %346, %347 : vector<16x32xf32>
    %c1_94 = arith.constant 1 : index
    %c0_95 = arith.constant 0 : index
    %c0_96 = arith.constant 0 : index
    %349 = vector.load %arg6[%c1_94, %c0_95, %c0_96] : memref<2x32x64xf32, #tpu.memory_space<vmem>>, vector<1x32x64xf32>
    %350 = vector.shape_cast %349 : vector<1x32x64xf32> to vector<32x64xf32>
    %cst_97 = arith.constant dense<0.000000e+00> : vector<16x64xf32>
    %351 = tpu.matmul %348, %350, %cst_97 {dimension_numbers = #tpu.dot_dimension_numbers<[1], [0], [0], [1], [0, 0, 1, 1], [], []>} : vector<16x32xf32>, vector<32x64xf32>, vector<16x64xf32> -> vector<16x64xf32>
    %352 = vector.extract_strided_slice %1 {offsets = [14, 0], sizes = [1, 64], strides = [1, 1]} : vector<18x96xf32> to vector<1x64xf32>
    %353 = vector.broadcast %352 : vector<1x64xf32> to vector<16x64xf32>
    %354 = arith.addf %351, %353 : vector<16x64xf32>
    %cst_98 = arith.constant 5.000000e-01 : f32
    %355 = vector.broadcast %cst_98 : f32 to vector<16x64xf32>
    %356 = arith.mulf %355, %354 : vector<16x64xf32>
    %cst_99 = arith.constant 0.707106769 : f32
    %357 = vector.broadcast %cst_99 : f32 to vector<16x64xf32>
    %358 = arith.mulf %354, %357 : vector<16x64xf32>
    %359 = math.erf %358 : vector<16x64xf32>
    %cst_100 = arith.constant 1.000000e+00 : f32
    %360 = vector.broadcast %cst_100 : f32 to vector<16x64xf32>
    %361 = arith.addf %360, %359 : vector<16x64xf32>
    %362 = arith.mulf %356, %361 : vector<16x64xf32>
    %c1_101 = arith.constant 1 : index
    %c0_102 = arith.constant 0 : index
    %c0_103 = arith.constant 0 : index
    %363 = vector.load %arg7[%c1_101, %c0_102, %c0_103] : memref<2x64x32xf32, #tpu.memory_space<vmem>>, vector<1x64x32xf32>
    %364 = vector.shape_cast %363 : vector<1x64x32xf32> to vector<64x32xf32>
    %cst_104 = arith.constant dense<0.000000e+00> : vector<16x32xf32>
    %365 = tpu.matmul %362, %364, %cst_104 {dimension_numbers = #tpu.dot_dimension_numbers<[1], [0], [0], [1], [0, 0, 1, 1], [], []>} : vector<16x64xf32>, vector<64x32xf32>, vector<16x32xf32> -> vector<16x32xf32>
    %366 = vector.extract_strided_slice %1 {offsets = [15, 0], sizes = [1, 32], strides = [1, 1]} : vector<18x96xf32> to vector<1x32xf32>
    %367 = vector.broadcast %366 : vector<1x32xf32> to vector<16x32xf32>
    %368 = arith.addf %365, %367 : vector<16x32xf32>
    %369 = arith.addf %368, %348 : vector<16x32xf32>
    %370 = vector.extract_strided_slice %1 {offsets = [16, 0], sizes = [1, 32], strides = [1, 1]} : vector<18x96xf32> to vector<1x32xf32>
    %371 = vector.extract_strided_slice %1 {offsets = [17, 0], sizes = [1, 32], strides = [1, 1]} : vector<18x96xf32> to vector<1x32xf32>
    %cst_105 = arith.constant dense<0.000000e+00> : vector<16xf32>
    %372 = vector.multi_reduction <add>, %369, %cst_105 [1] : vector<16x32xf32> to vector<16xf32>
    %373 = vector.shape_cast %372 : vector<16xf32> to vector<16x1xf32>
    %cst_106 = arith.constant 3.200000e+01 : f32
    %374 = vector.broadcast %cst_106 : f32 to vector<16x1xf32>
    %375 = arith.divf %373, %374 : vector<16x1xf32>
    %376 = vector.broadcast %375 : vector<16x1xf32> to vector<16x32xf32>
    %377 = arith.subf %369, %376 : vector<16x32xf32>
    %378 = arith.mulf %377, %377 : vector<16x32xf32>
    %cst_107 = arith.constant dense<0.000000e+00> : vector<16xf32>
    %379 = vector.multi_reduction <add>, %378, %cst_107 [1] : vector<16x32xf32> to vector<16xf32>
    %380 = vector.shape_cast %379 : vector<16xf32> to vector<16x1xf32>
    %cst_108 = arith.constant 3.200000e+01 : f32
    %381 = vector.broadcast %cst_108 : f32 to vector<16x1xf32>
    %382 = arith.divf %380, %381 : vector<16x1xf32>
    %383 = vector.broadcast %375 : vector<16x1xf32> to vector<16x32xf32>
    %384 = arith.subf %369, %383 : vector<16x32xf32>
    %cst_109 = arith.constant 9.99999996E-13 : f32
    %385 = vector.broadcast %cst_109 : f32 to vector<16x1xf32>
    %386 = arith.addf %382, %385 : vector<16x1xf32>
    %387 = math.rsqrt %386 : vector<16x1xf32>
    %388 = vector.broadcast %387 : vector<16x1xf32> to vector<16x32xf32>
    %389 = arith.mulf %384, %388 : vector<16x32xf32>
    %390 = vector.broadcast %370 : vector<1x32xf32> to vector<16x32xf32>
    %391 = arith.mulf %389, %390 : vector<16x32xf32>
    %392 = vector.broadcast %371 : vector<1x32xf32> to vector<16x32xf32>
    %393 = arith.addf %391, %392 : vector<16x32xf32>
    %394 = vector.extract_strided_slice %393 {offsets = [0, 0], sizes = [8, 32], strides = [1, 1]} : vector<16x32xf32> to vector<8x32xf32>
    %c0_110 = arith.constant 0 : index
    %c0_111 = arith.constant 0 : index
    %c0_112 = arith.constant 0 : index
    %395 = vector.load %arg9[%c0_110, %c0_111, %c0_112] : memref<2x8x32xf32, #tpu.memory_space<vmem>>, vector<1x8x32xf32>
    %396 = vector.shape_cast %395 : vector<1x8x32xf32> to vector<8x32xf32>
    %397 = vector.shape_cast %394 : vector<8x32xf32> to vector<1x8x32xf32>
    tpu.vector_store %arg9[%c0_110, %c0_111, %c0_112], %397 {strides = array<i32>} : memref<2x8x32xf32, #tpu.memory_space<vmem>>, vector<1x8x32xf32>,
    %398 = vector.extract_strided_slice %393 {offsets = [8, 0], sizes = [8, 32], strides = [1, 1]} : vector<16x32xf32> to vector<8x32xf32>
    %c1_113 = arith.constant 1 : index
    %c0_114 = arith.constant 0 : index
    %c0_115 = arith.constant 0 : index
    %399 = vector.load %arg9[%c1_113, %c0_114, %c0_115] : memref<2x8x32xf32, #tpu.memory_space<vmem>>, vector<1x8x32xf32>
    %400 = vector.shape_cast %399 : vector<1x8x32xf32> to vector<8x32xf32>
    %401 = vector.shape_cast %398 : vector<8x32xf32> to vector<1x8x32xf32>
    tpu.vector_store %arg9[%c1_113, %c0_114, %c0_115], %401 {strides = array<i32>} : memref<2x8x32xf32, #tpu.memory_space<vmem>>, vector<1x8x32xf32>,
    %402 = vector.extract_strided_slice %393 {offsets = [0, 0], sizes = [1, 32], strides = [1, 1]} : vector<16x32xf32> to vector<1x32xf32>
    %403 = vector.extract_strided_slice %393 {offsets = [8, 0], sizes = [1, 32], strides = [1, 1]} : vector<16x32xf32> to vector<1x32xf32>
    %404 = tpu.concatenate %402, %403 in 0 : vector<1x32xf32>, vector<1x32xf32> -> vector<2x32xf32>
    %c0_116 = arith.constant 0 : index
    %c0_117 = arith.constant 0 : index
    %405 = vector.load %arg10[%c0_116, %c0_117] : memref<2x32xf32, #tpu.memory_space<vmem>>, vector<2x32xf32>
    tpu.vector_store %arg10[%c0_116, %c0_117], %404 {strides = array<i32>} : memref<2x32xf32, #tpu.memory_space<vmem>>, vector<2x32xf32>,
    return
  }
}

</mosaic_0001>

<bundles_post_ra>
// kernel: bert_forward.1
= control target key start
LH: loop header
LB: loop body
LE: loop exit
PB: predicated region body
PF: predicated region fallthrough
CT: control target
= control target key end

     0   :  { %16 = vsyncpa [#allocation3], 0  ;;  %v2304_v2 = vmov 0   ;;  %s2963_s0 = inlined_call_operand.vmem [shape: s32[16,1], index: 0, kind: input, shape index: {}]   ;;  %s2964_s1 = inlined_call_operand.vmem [shape: s32[16,1], index: 1, kind: input, shape index: {}]   ;;  %s2965_s2 = inlined_call_operand.vmem [shape: f32[2,8], index: 2, kind: input, shape index: {}]   ;;  %s2966_s3 = inlined_call_operand.vmem [shape: f32[128,32], index: 3, kind: input, shape index: {}]   ;;  %s2967_s4 = inlined_call_operand.vmem [shape: f32[2,32,96], index: 4, kind: input, shape index: {}]   ;;  %s2968_s5 = inlined_call_operand.vmem [shape: f32[2,32,32], index: 5, kind: input, shape index: {}]   ;;  %s2969_s6 = inlined_call_operand.vmem [shape: f32[2,32,64], index: 6, kind: input, shape index: {}]   ;;  %s2970_s7 = inlined_call_operand.vmem [shape: f32[2,64,32], index: 7, kind: input, shape index: {}]   ;;  %s2971_s8 = inlined_call_operand.vmem [shape: f32[18,96], index: 8, kind: input, shape index: {}]   ;;  %s2972_s9 = inlined_call_operand.hbm [shape: f32[2,8,32], index: 9, kind: output, shape index: {0}]   ;;  %s2973_s10 = inlined_call_operand.hbm [shape: f32[2,32], index: 10, kind: output, shape index: {1}]  }
   0x1   :  { %v56_v0 = vld [vmem:[%s2964_s1] sm:$0xff]  ;;  %2156 = vset.pattern.permute.xlu0 %v2304_v2  ;;  %2157 = vset.pattern.permute.xlu1 %v2304_v2  ;;  %v50_v3 = vld [vmem:[%s2966_s3 + $0x78] sm:$0xff] }
   0x2   :  { %v54_v1 = vld [vmem:[%s2963_s0] sm:$0xff]  ;;  %73 = vperm.xlu0 %2156, %v56_v0  }
   0x3   :  { %v48_v4 = vld [vmem:[%s2966_s3 + $0x60] sm:$0xff]  ;;  %61 = vperm.xlu1 %2157, %v54_v1  }
   0x4   :  { %17 = vsyncpa [#allocation5], 0  ;;  %106 = vmatpush.msra.mxu1 %v50_v3  ;;  %v47_v5 = vld [vmem:[%s2966_s3 + $0x58] sm:$0xff]  ;;  %v46_v6 = vld [vmem:[%s2966_s3 + $0x50] sm:$0xff]  ;;  %v58_v19 = vlaneseq  ;;  %vm84_vm0 = vcmask 64512   ;;  %v2305_v22 = vmov 0.0  }
   0x5   :  { %v57_v7 = vld [vmem:[%s2964_s1 + $0x8] sm:$0xff]  ;;  %v44_v10 = vld [vmem:[%s2966_s3 + $0x40] sm:$0xff]  ;;  %v43_v11 = vld [vmem:[%s2966_s3 + $0x38] sm:$0xff]  ;;  %vm114_vm4 = vcmask 850944   ;;  %vm146_vm6 = vcmask 261120   ;;  %v2306_v41 = vmov 32.0  }
   0x6   :  { %124 = vmatpush.msrb.mxu1 %v48_v4  ;;  %v55_v8 = vld [vmem:[%s2963_s0 + $0x8] sm:$0xff]  ;;  %v42_v12 = vld [vmem:[%s2966_s3 + $0x30] sm:$0xff]  ;;  %v40_v14 = vld [vmem:[%s2966_s3 + $0x20] sm:$0xff]  ;;  %v59_v20 = vand.u32 127, %v58_v19  ;;  %2158 = vrcp.f32 %v2306_v41  ;;  %s2307_s16 = smov 104   ;;  %s2308_s17 = smov 96  }
   0x7   :  { %v45_v9 = vld [vmem:[%s2966_s3 + $0x48] sm:$0xff]  ;;  %v39_v15 = vld [vmem:[%s2966_s3 + $0x18] sm:$0xff]  ;;  %v38_v16 = vld [vmem:[%s2966_s3 + $0x10] sm:$0xff]  ;;  %s2309_s18 = smov 80   ;;  %s2310_s19 = smov 88   ;;  %vm678_vm14 = vcmask 130048  }
   0x8   :  { %125 = vmatpush.msrb.mxu1 %v47_v5  ;;  %v41_v13 = vld [vmem:[%s2966_s3 + $0x28] sm:$0xff]  ;;  %v36_v18 = vld [vmem:[%s2966_s3] sm:$0xff]  ;;  %v212_v58 = vld [vmem:[%s2967_s4 + $0x18] sm:$0xff]  ;;  %s2311_s20 = smov 120   ;;  %s2312_s21 = smov 72   ;;  %vm680_vm15 = vcmask 195584  }
   0x9   :  { %v37_v17 = vld [vmem:[%s2966_s3 + $0x8] sm:$0xff]  ;;  %2132 = vmatpush.msra.mxu2 %v212_v58  ;;  %v211_v59 = vld [vmem:[%s2967_s4 + $0x10] sm:$0xff]  ;;  %v209_v61 = vld [vmem:[%s2967_s4] sm:$0xff]  ;;  %s2313_s22 = smov 64   ;;  %s2314_s23 = smov 112  }
   0xa   :  { %126 = vmatpush.msrb.mxu1 %v46_v6  ;;  %76 = vperm.xlu0 %2156, %v57_v7   ;;  %v49_v33 = vld [vmem:[%s2966_s3 + $0x68] sm:$0xff]  ;;  %s2316_s26 = smov 56   ;;  %s2317_s27 = smov 40  }
   0xb   :  { %64 = vperm.xlu1 %2157, %v55_v8   ;;  %2133 = vmatpush.msra.mxu2 %v211_v59  ;;  %v210_v60 = vld [vmem:[%s2967_s4 + $0x8] sm:$0xff]  ;;  %v2463_v8 = vld [vmem:[%s2971_s8] sm:$0xff]  ;;  %s2318_s28 = smov 16   ;;  %s2319_s3 = smov 8  }
   0xc   :  { %127 = vmatpush.msrb.mxu1 %v45_v9  ;;  %v2159_v42 = vpop.eup %2158  ;;  %s2320_s29 = smov 24   ;;  %s2022_s12 = sshll.u32 %s2973_s10, 4  ;;  %s2023_s12 = int_to_ptr.hbm [resolvable:$true] %s2022_s12 }
   0xd   :  { %v154_v43 = vmul.f32 32.0, %v2159_v42  ;;  %vm158_vm7 = vweird.f32 %v2159_v42  ;;  %2134 = vmatpush.msra.mxu2 %v210_v60 }
   0xe   :  { %128 = vmatpush.msrb.mxu1 %v44_v10 }
   0xf   :  { %v155_v44 = vsub.f32 1.0, %v154_v43  ;;  %2135 = vmatpush.msra.mxu2 %v209_v61 }
  0x10   :  { %129 = vmatpush.msrb.mxu1 %v43_v11 }
  0x11   :  { %v156_v45 = vmul.f32 %v2159_v42, %v155_v44 }
  0x12   :  { %130 = vmatpush.msrb.mxu1 %v42_v12 }
  0x13   :  { %v157_v46 = vadd.f32 %v2159_v42, %v156_v45 }
  0x14   :  { %131 = vmatpush.msrb.mxu1 %v41_v13  ;;  %v198_v13 = vperm.slane %v2463_v8, 0 }
  0x15   :  { %v2440_v47 = vsel %vm158_vm7, %v2159_v42, %v157_v46 }
  0x16   :  { %132 = vmatpush.msrb.mxu1 %v40_v14 }
  0x18   :  { %133 = vmatpush.msrb.mxu1 %v39_v15 }
  0x1a   :  { %134 = vmatpush.msrb.mxu1 %v38_v16 }
  0x1c   :  { %135 = vmatpush.msrb.mxu1 %v37_v17  ;;  %v201_v17 = vperm.slane %v2463_v8, 1 }
  0x1e   :  { %136 = vmatpush.msrb.mxu1 %v36_v18 }
  0x74   :  { %v74_v21 = vpop.permute.xlu0 %73 }
  0x75   :  { %vm78_vm1 = vcmp.eq.s32.totalorder %v59_v20, %v74_v21  ;;  %v62_v26 = vpop.permute.xlu1 %61 }
  0x76   :  { %v2038_v23 = vsel %vm78_vm1, 1.0, %v2305_v22  ;;  %vm66_vm3 = vcmp.eq.s32.totalorder %v59_v20, %v62_v26 }
  0x77   :  { %2040 = vmatmul.msk.f32.vlgmr.msra.gmra.mxu1 %vm84_vm0, %v2038_v23  ;;  %v2036_v27 = vsel %vm66_vm3, 1.0, %v2305_v22 }
  0x78   :  { %232 = vmatpush.msra.mxu1 %v212_v58 }
  0x7a   :  { %233 = vmatpush.msra.mxu1 %v211_v59 }
  0x7c   :  { %v77_v24 = vpop.permute.xlu0 %76  ;;  %234 = vmatpush.msra.mxu1 %v210_v60 }
  0x7d   :  { %vm79_vm2 = vcmp.eq.s32.totalorder %v59_v20, %v77_v24  ;;  %v65_v28 = vpop.permute.xlu1 %64 }
  0x7e   :  { %v2039_v25 = vsel %vm79_vm2, 1.0, %v2305_v22  ;;  %vm67_vm5 = vcmp.eq.s32.totalorder %v59_v20, %v65_v28  ;;  %235 = vmatpush.msra.mxu1 %v209_v61 }
  0x7f   :  { %2041 = vmatmul.msk.f32.gmra.mxu1 %vm84_vm0, %v2039_v25  ;;  %v2037_v29 = vsel %vm67_vm5, 1.0, %v2305_v22 }
  0x87   :  { %2042 = vmatmul.msk.f32.vlgmr.msrb.gmra.mxu1 %vm114_vm4, %v2036_v27  ;;  %v213_v27 = vperm.slane %v2463_v8, 2 }
  0x8f   :  { %2043 = vmatmul.msk.f32.gmra.mxu1 %vm114_vm4, %v2037_v29 }
  0xf4   :  { %v108_v30 = vpop.f32.mrf.mxu1 }
  0xfc   :  { %v111_v31 = vpop.f32.mrf.mxu1 }
 0x104   :  { %v138_v32 = vpop.f32.mrf.mxu1 }
 0x105   :  { %v139_v34 = vadd.f32 %v138_v32, %v108_v30 }
 0x107   :  { %v144_v35 = vadd.f32 %v139_v34, %v49_v33 }
 0x109   :  { %v147_v36 = vsel %vm146_vm6, %v144_v35, 0.0 }
 0x10a   :  { %148 = vadd.xlane.f32.xlu2 %v147_v36 }
 0x10c   :  { %v141_v37 = vpop.f32.mrf.mxu1 }
 0x10d   :  { %v142_v38 = vadd.f32 %v141_v37, %v111_v31 }
 0x10f   :  { %v145_v39 = vadd.f32 %v142_v38, %v49_v33 }
 0x111   :  { %v150_v40 = vsel %vm146_vm6, %v145_v39, 0.0 }
 0x112   :  { %151 = vadd.xlane.f32.xlu2 %v150_v40 }
 0x17d   :  { %v149_v48 = vpop.xlane.xlu2 %148 }
 0x17e   :  { %v160_v49 = vmul.f32 %v2440_v47, %v149_v48  ;;  %v204_v48 = vld [vmem:[%s2965_s2] sm:$0x3]  ;;  %s2315_s2 = smov 48  }
 0x180   :  { %v162_v50 = vsub.f32 %v144_v35, %v160_v49  ;;  %v205_v49 = vsub.f32 1.0, %v204_v48 }
 0x182   :  { %v164_v51 = vmul.f32 %v162_v50, %v162_v50 }
 0x184   :  { %v166_v52 = vsel %vm146_vm6, %v164_v51, 0.0 }
 0x185   :  { %167 = vadd.xlane.f32.xlu0 %v166_v52  ;;  %v152_v53 = vpop.xlane.xlu2 %151 }
 0x186   :  { %v161_v54 = vmul.f32 %v2440_v47, %v152_v53 }
 0x188   :  { %v163_v55 = vsub.f32 %v145_v39, %v161_v54 }
 0x18a   :  { %v165_v56 = vmul.f32 %v163_v55, %v163_v55 }
 0x18c   :  { %v169_v57 = vsel %vm146_vm6, %v165_v56, 0.0 }
 0x18d   :  { %170 = vadd.xlane.f32.xlu1 %v169_v57 }
 0x1f8   :  { %v168_v62 = vpop.xlane.xlu0 %167 }
 0x1f9   :  { %v172_v63 = vmul.f32 %v168_v62, %v2440_v47 }
 0x1fb   :  { %v174_v0 = vadd.f32 1e-12, %v172_v63 }
 0x1fd   :  { %2160 = vrsqrt.f32 %v174_v0  ;;  %vm182_vm9 = vweird.f32 %v174_v0 }
 0x200   :  { %v171_v1 = vpop.xlane.xlu1 %170 }
 0x201   :  { %v173_v2 = vmul.f32 %v171_v1, %v2440_v47 }
 0x203   :  { %v2161_v3 = vpop.eup %2160  ;;  %v175_v4 = vadd.f32 1e-12, %v173_v2 }
 0x204   :  { %v177_v5 = vmul.f32 %v2161_v3, %v174_v0  ;;  %vm183_vm8 = vweird.f32 %v2161_v3 }
 0x205   :  { %2162 = vrsqrt.f32 %v175_v4  ;;  %vm184_vm10 = vmor %vm182_vm9, %vm183_vm8  ;;  %vm192_vm12 = vweird.f32 %v175_v4 }
 0x206   :  { %v178_v6 = vmul.f32 %v2161_v3, %v177_v5 }
 0x208   :  { %v179_v7 = vmul.f32 0.5, %v178_v6 }
 0x20a   :  { %v180_v9 = vsub.f32 1.5, %v179_v7 }
 0x20b   :  { %v2163_v10 = vpop.eup %2162 }
 0x20c   :  { %v181_v11 = vmul.f32 %v2161_v3, %v180_v9  ;;  %v187_v12 = vmul.f32 %v2163_v10, %v175_v4  ;;  %vm193_vm11 = vweird.f32 %v2163_v10 }
 0x20d   :  { %vm194_vm13 = vmor %vm192_vm12, %vm193_vm11  ;;  %vm1018_vm12 = vcmask 523264  }
 0x20e   :  { %v185_v14 = vsel %vm184_vm10, %v2161_v3, %v181_v11  ;;  %v188_v15 = vmul.f32 %v2163_v10, %v187_v12 }
 0x20f   :  { %v196_v16 = vmul.f32 %v185_v14, %v162_v50  ;;  %v206_v50 = vmul.f32 -10000.0, %v205_v49 }
 0x210   :  { %v189_v18 = vmul.f32 0.5, %v188_v15 }
 0x211   :  { %v199_v19 = vmul.f32 %v198_v13, %v196_v16  ;;  %v2531_v51 = vperm.slane %v206_v50, 0  ;;  %v2539_v62 = vperm.slane %v206_v50, 1 }
 0x212   :  { %v190_v20 = vsub.f32 1.5, %v189_v18 }
 0x213   :  { %v2467_v21 = vadd.f32 %v201_v17, %v199_v19 }
 0x214   :  { %v191_v22 = vmul.f32 %v2163_v10, %v190_v20 }
 0x215   :  { %2044 = vmatmul.msk.f32.vlgmr.msra.gmra.mxu1 %vm146_vm6, %v2467_v21 }
 0x216   :  { %v195_v23 = vsel %vm194_vm13, %v2163_v10, %v191_v22 }
 0x217   :  { %v197_v24 = vmul.f32 %v195_v23, %v163_v55 }
 0x219   :  { %v200_v25 = vmul.f32 %v198_v13, %v197_v24 }
 0x21b   :  { %v2471_v26 = vadd.f32 %v201_v17, %v200_v25 }
 0x21d   :  { %2045 = vmatmul.msk.f32.vlgmr.msra.gmra.mxu2 %vm146_vm6, %v2471_v26 }
 0x292   :  { %v237_v28 = vpop.f32.mrf.mxu1 }
 0x293   :  { %v2476_v29 = vadd.f32 %v237_v28, %v213_v27 }
 0x295   :  { %326 = vrot.lane.b32.xlu0 %v2476_v29, %s2307_s16  ;;  %244 = vrot.lane.b32.xlu2 %v2476_v29, %s2308_s17 }
 0x296   :  { %300 = vrot.lane.b32.xlu1 %v2476_v29, %s2309_s18 }
 0x29d   :  { %272 = vrot.lane.b32.xlu2 %v2476_v29, %s2310_s19 }
 0x2a0   :  { %v240_v30 = vpop.f32.mrf.mxu2 }
 0x2a1   :  { %v2486_v31 = vadd.f32 %v240_v30, %v213_v27 }
 0x2a3   :  { %383 = vrot.lane.b32.xlu1 %v2486_v31, %s2310_s19  ;;  %411 = vrot.lane.b32.xlu0 %v2486_v31, %s2309_s18 }
 0x2a5   :  { %270 = vrot.lane.b32.xlu2 %v2476_v29, %s2311_s20 }
 0x2ab   :  { %437 = vrot.lane.b32.xlu1 %v2486_v31, %s2307_s16  ;;  %439 = vrot.lane.b32.xlu0 %v2486_v31, %s2312_s21 }
 0x2ad   :  { %328 = vrot.lane.b32.xlu2 %v2476_v29, %s2312_s21 }
 0x2b3   :  { %561 = vrot.lane.b32.xlu1 %v2476_v29, %s2313_s22 }
 0x2b5   :  { %298 = vrot.lane.b32.xlu2 %v2476_v29, %s2314_s23 }
 0x2bd   :  { %355 = vrot.lane.b32.xlu2 %v2486_v31, %s2308_s17 }
 0x2c5   :  { %409 = vrot.lane.b32.xlu2 %v2486_v31, %s2314_s23 }
 0x2cd   :  { %381 = vrot.lane.b32.xlu2 %v2486_v31, %s2311_s20 }
 0x2ef   :  { %v245_v32 = vpop.permute.xlu2 %244 }
 0x2f0   :  { %2046 = vmatpush.xpose.msk.msra.mxu3 %vm84_vm0, %v245_v32 }
 0x2f3   :  { %2047 = vmatmul.msk.f32.vlgmr.msra.gmra.mxu3 %vm84_vm0, %v2476_v29 }
 0x2f7   :  { %v273_v33 = vpop.permute.xlu2 %272 }
 0x2f8   :  { %2048 = vmatpush.xpose.msk.msrb.mxu3 %vm84_vm0, %v273_v33 }
 0x2ff   :  { %v271_v34 = vpop.permute.xlu2 %270 }
 0x300   :  { %2049 = vmatmul.msk.f32.vlgmr.msrb.gmra.mxu3 %vm84_vm0, %v271_v34 }
 0x307   :  { %v329_v35 = vpop.permute.xlu2 %328  ;;  %v327_v37 = vpop.permute.xlu0 %326 }
 0x308   :  { %v301_v36 = vpop.permute.xlu1 %300  ;;  %2052 = vmatpush.xpose.msk.msra.mxu3 %vm84_vm0, %v329_v35 }
 0x309   :  { %2050 = vmatpush.xpose.msk.msra.mxu0 %vm84_vm0, %v301_v36 }
 0x30b   :  { %2053 = vmatmul.msk.f32.vlgmr.msra.gmra.mxu3 %vm84_vm0, %v327_v37 }
 0x30f   :  { %v299_v38 = vpop.permute.xlu2 %298 }
 0x310   :  { %2051 = vmatmul.msk.f32.vlgmr.msra.gmra.mxu0 %vm84_vm0, %v299_v38 }
 0x315   :  { %v412_v39 = vpop.permute.xlu0 %411  ;;  %v384_v40 = vpop.permute.xlu1 %383 }
 0x316   :  { %2056 = vmatpush.xpose.msk.msrb.mxu0 %vm84_vm0, %v384_v40  ;;  %2058 = vmatpush.xpose.msk.msrb.mxu3 %vm84_vm0, %v412_v39 }
 0x317   :  { %v356_v41 = vpop.permute.xlu2 %355 }
 0x318   :  { %2054 = vmatpush.xpose.msk.msrb.mxu2 %vm84_vm0, %v356_v41 }
 0x31b   :  { %2055 = vmatmul.msk.f32.vlgmr.msrb.gmra.mxu2 %vm84_vm0, %v2486_v31 }
 0x31d   :  { %v440_v42 = vpop.permute.xlu0 %439  ;;  %v438_v43 = vpop.permute.xlu1 %437 }
 0x31e   :  { %2060 = vmatpush.xpose.msk.msra.mxu2 %vm84_vm0, %v440_v42 }
 0x31f   :  { %v410_v44 = vpop.permute.xlu2 %409 }
 0x320   :  { %2059 = vmatmul.msk.f32.vlgmr.msrb.gmra.mxu3 %vm84_vm0, %v410_v44 }
 0x323   :  { %2061 = vmatmul.msk.f32.vlgmr.msra.gmra.mxu2 %vm84_vm0, %v438_v43 }
 0x325   :  { %v562_v45 = vpop.permute.xlu1 %561 }
 0x326   :  { %582 = vmatpush.msra.mxu0 %v562_v45 }
 0x327   :  { %v382_v46 = vpop.permute.xlu2 %381 }
 0x328   :  { %2057 = vmatmul.msk.f32.vlgmr.msrb.gmra.mxu0 %vm84_vm0, %v382_v46 }
 0x376   :  { %v267_v52 = vpop.f32.mrf.mxu3 }
 0x377   :  { %v465_v53 = vadd.f32 %v267_v52, %v2531_v51 }
 0x379   :  { %v473_v54 = vsel %vm84_vm0, %v465_v53, -inf }
 0x37a   :  { %474 = vmax.xlane.f32.xlu0 %v473_v54 }
 0x383   :  { %v295_v55 = vpop.f32.mrf.mxu3 }
 0x384   :  { %v466_v56 = vadd.f32 %v295_v55, %v2531_v51 }
 0x386   :  { %v476_v57 = vsel %vm84_vm0, %v466_v56, -inf }
 0x387   :  { %477 = vmax.xlane.f32.xlu2 %v476_v57 }
 0x38d   :  { %v323_v58 = vpop.f32.mrf.mxu0 }
 0x38e   :  { %v467_v59 = vadd.f32 %v323_v58, %v2531_v51  ;;  %v351_v61 = vpop.f32.mrf.mxu3 }
 0x38f   :  { %v468_v4 = vadd.f32 %v351_v61, %v2531_v51 }
 0x390   :  { %v479_v60 = vsel %vm84_vm0, %v467_v59, -inf }
 0x391   :  { %480 = vmax.xlane.f32.xlu1 %v479_v60  ;;  %v482_v10 = vsel %vm84_vm0, %v468_v4, -inf }
 0x39e   :  { %v378_v63 = vpop.f32.mrf.mxu2 }
 0x39f   :  { %v2542_v0 = vadd.f32 %v378_v63, %v2539_v62 }
 0x3a1   :  { %v485_v1 = vsel %vm84_vm0, %v2542_v0, -inf }
 0x3a2   :  { %486 = vmax.xlane.f32.xlu0 %v485_v1 }
 0x3a3   :  { %v434_v2 = vpop.f32.mrf.mxu3 }
 0x3a4   :  { %v2547_v3 = vadd.f32 %v434_v2, %v2539_v62 }
 0x3a5   :  { %v406_v5 = vpop.f32.mrf.mxu0 }
 0x3a6   :  { %v470_v6 = vadd.f32 %v406_v5, %v2539_v62  ;;  %v491_v7 = vsel %vm84_vm0, %v2547_v3, -inf  ;;  %v462_v11 = vpop.f32.mrf.mxu2 }
 0x3a7   :  { %492 = vmax.xlane.f32.xlu1 %v491_v7  ;;  %v472_v12 = vadd.f32 %v462_v11, %v2539_v62 }
 0x3a8   :  { %v488_v9 = vsel %vm84_vm0, %v470_v6, -inf }
 0x3a9   :  { %489 = vmax.xlane.f32.xlu2 %v488_v9  ;;  %v494_v13 = vsel %vm84_vm0, %v472_v12, -inf }
 0x3aa   :  { %483 = vmax.xlane.f32.xlu0 %v482_v10 }
 0x3b2   :  { %495 = vmax.xlane.f32.xlu0 %v494_v13 }
 0x3c1   :  { %613 = vrot.lane.b32.xlu2 %v2476_v29, %s2315_s2 }
 0x3c6   :  { %587 = vrot.lane.b32.xlu0 %v2476_v29, %s2316_s26 }
 0x3ed   :  { %v475_v17 = vpop.xlane.xlu0 %474 }
 0x3ee   :  { %v497_v23 = vsub.f32 %v465_v53, %v475_v17 }
 0x3f0   :  { %v505_v25 = vmul.f32 1.442695, %v497_v23 }
 0x3fa   :  { %v478_v14 = vpop.xlane.xlu2 %477 }
 0x3fb   :  { %v498_v15 = vsub.f32 %v466_v56, %v478_v14 }
 0x3fd   :  { %v507_v16 = vmul.f32 1.442695, %v498_v15 }
 0x3ff   :  { %2164 = vpow2.f32 %v507_v16 }
 0x404   :  { %v481_v18 = vpop.xlane.xlu1 %480 }
 0x405   :  { %v2561_v19 = vpop.eup %2164  ;;  %v499_v20 = vsub.f32 %v467_v59, %v481_v18 }
 0x406   :  { %v524_v22 = vsel %vm84_vm0, %v2561_v19, 0.0 }
 0x407   :  { %v509_v24 = vmul.f32 1.442695, %v499_v20  ;;  %525 = vadd.xlane.f32.xlu1 %v524_v22 }
 0x409   :  { %2166 = vpow2.f32 %v509_v24 }
 0x40a   :  { %2168 = vpow2.f32 %v505_v25 }
 0x40f   :  { %v2167_v27 = vpop.eup %2166 }
 0x410   :  { %v527_v28 = vsel %vm84_vm0, %v2167_v27, 0.0  ;;  %v2169_v30 = vpop.eup %2168 }
 0x411   :  { %528 = vadd.xlane.f32.xlu2 %v527_v28  ;;  %v521_v33 = vsel %vm84_vm0, %v2169_v30, 0.0 }
 0x415   :  { %v487_v32 = vpop.xlane.xlu0 %486 }
 0x416   :  { %v501_v58 = vsub.f32 %v2542_v0, %v487_v32 }
 0x418   :  { %v513_v59 = vmul.f32 1.442695, %v501_v58 }
 0x419   :  { %522 = vadd.xlane.f32.xlu2 %v521_v33 }
 0x41a   :  { %v493_v53 = vpop.xlane.xlu1 %492 }
 0x41b   :  { %v503_v54 = vsub.f32 %v2547_v3, %v493_v53 }
 0x41c   :  { %v490_v34 = vpop.xlane.xlu2 %489 }
 0x41d   :  { %v502_v35 = vsub.f32 %v470_v6, %v490_v34  ;;  %v484_v36 = vpop.xlane.xlu0 %483  ;;  %v517_v55 = vmul.f32 1.442695, %v503_v54 }
 0x41e   :  { %v500_v37 = vsub.f32 %v468_v4, %v484_v36 }
 0x41f   :  { %v515_v38 = vmul.f32 1.442695, %v502_v35 }
 0x420   :  { %v511_v39 = vmul.f32 1.442695, %v500_v37 }
 0x421   :  { %2170 = vpow2.f32 %v515_v38  ;;  %v804_v38 = vld [vmem:[%s2968_s5 + $0x18] sm:$0xff] }
 0x422   :  { %2172 = vpow2.f32 %v511_v39  ;;  %v803_v39 = vld [vmem:[%s2968_s5 + $0x10] sm:$0xff] }
 0x424   :  { %v614_v40 = vpop.permute.xlu2 %613 }
 0x425   :  { %v496_v41 = vpop.xlane.xlu0 %495  ;;  %634 = vmatpush.msrb.mxu2 %v614_v40  ;;  %v802_v40 = vld [vmem:[%s2968_s5 + $0x8] sm:$0xff] }
 0x426   :  { %v504_v42 = vsub.f32 %v472_v12, %v496_v41  ;;  %v801_v41 = vld [vmem:[%s2968_s5] sm:$0xff] }
 0x427   :  { %v2171_v43 = vpop.eup %2170 }
 0x428   :  { %v2173_v44 = vpop.eup %2172  ;;  %v519_v45 = vmul.f32 1.442695, %v504_v42  ;;  %v536_v46 = vsel %vm84_vm0, %v2171_v43, 0.0 }
 0x429   :  { %537 = vadd.xlane.f32.xlu0 %v536_v46  ;;  %v530_v48 = vsel %vm84_vm0, %v2173_v44, 0.0 }
 0x42a   :  { %2174 = vpow2.f32 %v519_v45  ;;  %531 = vadd.xlane.f32.xlu1 %v530_v48 }
 0x42b   :  { %2176 = vpow2.f32 %v517_v55 }
 0x42c   :  { %2178 = vpow2.f32 %v513_v59 }
 0x430   :  { %v2175_v49 = vpop.eup %2174 }
 0x431   :  { %708 = vrot.lane.b32.xlu2 %v2486_v31, %s2316_s26  ;;  %v542_v50 = vsel %vm84_vm0, %v2175_v49, 0.0  ;;  %v2177_v56 = vpop.eup %2176 }
 0x432   :  { %543 = vadd.xlane.f32.xlu0 %v542_v50  ;;  %v539_v57 = vsel %vm84_vm0, %v2177_v56, 0.0  ;;  %v2179_v60 = vpop.eup %2178 }
 0x438   :  { %v588_v52 = vpop.permute.xlu0 %587 }
 0x439   :  { %608 = vmatpush.msra.mxu3 %v588_v52 }
 0x443   :  { %639 = vrot.lane.b32.xlu1 %v2476_v29, %s2317_s27  ;;  %v533_v29 = vsel %vm84_vm0, %v2179_v60, 0.0 }
 0x44b   :  { %734 = vrot.lane.b32.xlu1 %v2486_v31, %s2315_s2 }
 0x45a   :  { %540 = vadd.xlane.f32.xlu2 %v539_v57  ;;  %v805_v57 = vperm.slane %v2463_v8, 3 }
 0x472   :  { %760 = vrot.lane.b32.xlu2 %v2486_v31, %s2317_s27 }
 0x475   :  { %534 = vadd.xlane.f32.xlu1 %v533_v29 }
 0x47a   :  { %682 = vrot.lane.b32.xlu2 %v2486_v31, %s2313_s22  ;;  %v526_v61 = vpop.xlane.xlu1 %525 }
 0x47b   :  { %2180 = vrcp.f32 %v526_v61 }
 0x481   :  { %v2181_v63 = vpop.eup %2180 }
 0x482   :  { %v554_v1 = vmul.f32 %v2181_v63, %v2561_v19 }
 0x484   :  { %2063 = vmatmul.msk.f32.vlgmr.msra.gmra.mxu3 %vm84_vm0, %v554_v1  ;;  %v529_v0 = vpop.xlane.xlu2 %528 }
 0x485   :  { %2182 = vrcp.f32 %v529_v0 }
 0x48b   :  { %v2183_v2 = vpop.eup %2182 }
 0x48c   :  { %v555_v3 = vmul.f32 %v2183_v2, %v2167_v27  ;;  %v523_v4 = vpop.xlane.xlu2 %522 }
 0x48d   :  { %2184 = vrcp.f32 %v523_v4 }
 0x48e   :  { %2064 = vmatmul.msk.f32.vlgmr.msrb.gmra.mxu2 %vm84_vm0, %v555_v3 }
 0x493   :  { %v2185_v5 = vpop.eup %2184 }
 0x494   :  { %v553_v6 = vmul.f32 %v2185_v5, %v2169_v30  ;;  %v709_v7 = vpop.permute.xlu2 %708 }
 0x495   :  { %729 = vmatpush.msrb.mxu3 %v709_v7 }
 0x496   :  { %2062 = vmatmul.msk.f32.vlgmr.msra.gmra.mxu0 %vm84_vm0, %v553_v6 }
 0x49c   :  { %v538_v31 = vpop.xlane.xlu0 %537 }
 0x49d   :  { %2186 = vrcp.f32 %v538_v31  ;;  %v532_v11 = vpop.xlane.xlu1 %531 }
 0x49e   :  { %2188 = vrcp.f32 %v532_v11  ;;  %v889_v11 = vld [vmem:[%s2969_s6 + $0x10] sm:$0xff] }
 0x4a3   :  { %v2187_v9 = vpop.eup %2186 }
 0x4a4   :  { %v558_v10 = vmul.f32 %v2187_v9, %v2171_v43  ;;  %v2189_v12 = vpop.eup %2188 }
 0x4a5   :  { %v556_v13 = vmul.f32 %v2189_v12, %v2173_v44  ;;  %v544_v16 = vpop.xlane.xlu0 %543  ;;  %v888_v12 = vld [vmem:[%s2969_s6 + $0x8] sm:$0xff] }
 0x4a6   :  { %2067 = vmatmul.msk.f32.vlgmr.msrb.gmra.mxu3 %vm84_vm0, %v558_v10  ;;  %2190 = vrcp.f32 %v544_v16 }
 0x4ac   :  { %v2191_v18 = vpop.eup %2190 }
 0x4ad   :  { %v560_v20 = vmul.f32 %v2191_v18, %v2175_v49 }
 0x4b5   :  { %v640_v14 = vpop.permute.xlu1 %639 }
 0x4b6   :  { %660 = vmatpush.msrb.mxu0 %v640_v14 }
 0x4b7   :  { %2065 = vmatmul.msk.f32.vlgmr.msrb.gmra.mxu0 %vm84_vm0, %v556_v13  ;;  %v887_v13 = vld [vmem:[%s2969_s6] sm:$0xff] }
 0x4bd   :  { %v735_v15 = vpop.permute.xlu1 %734 }
 0x4be   :  { %755 = vmatpush.msra.mxu2 %v735_v15 }
 0x4cd   :  { %v541_v17 = vpop.xlane.xlu2 %540 }
 0x4ce   :  { %2192 = vrcp.f32 %v541_v17 }
 0x4d4   :  { %v2193_v19 = vpop.eup %2192 }
 0x4d5   :  { %v559_v22 = vmul.f32 %v2193_v19, %v2177_v56  ;;  %v761_v23 = vpop.permute.xlu2 %760 }
 0x4d6   :  { %781 = vmatpush.msra.mxu0 %v761_v23 }
 0x4d7   :  { %2068 = vmatmul.msk.f32.vlgmr.msra.gmra.mxu2 %vm84_vm0, %v559_v22  ;;  %2069 = vmatmul.msk.f32.vlgmr.msra.gmra.mxu0 %vm84_vm0, %v560_v20 }
 0x4dd   :  { %v683_v24 = vpop.permute.xlu2 %682 }
 0x4de   :  { %703 = vmatpush.msrb.mxu1 %v683_v24  ;;  %v881_v24 = vperm.slane %v2463_v8, 4 }
 0x4e0   :  { %824 = vmatpush.msra.mxu1 %v804_v38 }
 0x4e2   :  { %825 = vmatpush.msra.mxu1 %v803_v39 }
 0x4e4   :  { %826 = vmatpush.msra.mxu1 %v802_v40 }
 0x4e6   :  { %827 = vmatpush.msra.mxu1 %v801_v41 }
 0x4e8   :  { %v535_v25 = vpop.xlane.xlu1 %534 }
 0x4e9   :  { %2194 = vrcp.f32 %v535_v25 }
 0x4ef   :  { %v2195_v27 = vpop.eup %2194 }
 0x4f0   :  { %v557_v28 = vmul.f32 %v2195_v27, %v2179_v60 }
 0x4f2   :  { %2066 = vmatmul.msk.f32.vlgmr.msrb.gmra.mxu1 %vm84_vm0, %v557_v28  ;;  %v884_v28 = vperm.slane %v2463_v8, 5 }
 0x507   :  { %v610_v32 = vpop.f32.mrf.mxu3 }
 0x511   :  { %v636_v30 = vpop.f32.mrf.mxu2 }
 0x512   :  { %670 = vrot.lane.b32.xlu2 %v636_v30, %s2318_s28 }
 0x513   :  { %v584_v34 = vpop.f32.mrf.mxu0 }
 0x51a   :  { %666 = vrot.lane.b32.xlu2 %v610_v32, %s2319_s3 }
 0x529   :  { %v731_v33 = vpop.f32.mrf.mxu3 }
 0x52a   :  { %787 = vrot.lane.b32.xlu2 %v731_v33, %s2319_s3 }
 0x534   :  { %v662_v35 = vpop.f32.mrf.mxu0 }
 0x535   :  { %674 = vrot.lane.b32.xlu0 %v662_v35, %s2320_s29 }
 0x554   :  { %v783_v36 = vpop.f32.mrf.mxu0 }
 0x555   :  { %795 = vrot.lane.b32.xlu1 %v783_v36, %s2320_s29 }
 0x55a   :  { %v757_v37 = vpop.f32.mrf.mxu2 }
 0x55b   :  { %791 = vrot.lane.b32.xlu2 %v757_v37, %s2318_s28 }
 0x56c   :  { %v671_v42 = vpop.permute.xlu2 %670 }
 0x56f   :  { %v705_v52 = vpop.f32.mrf.mxu1 }
 0x574   :  { %v667_v43 = vpop.permute.xlu2 %666 }
 0x575   :  { %v677_v44 = vsel %vm84_vm0, %v584_v34, %v667_v43 }
 0x576   :  { %v679_v46 = vsel %vm678_vm14, %v677_v44, %v671_v42 }
 0x584   :  { %v788_v49 = vpop.permute.xlu2 %787 }
 0x585   :  { %v798_v53 = vsel %vm84_vm0, %v705_v52, %v788_v49 }
 0x5a7   :  { %v675_v45 = vpop.permute.xlu0 %674 }
 0x5a8   :  { %v681_v48 = vsel %vm680_vm15, %v679_v46, %v675_v45  ;;  %v891_v46 = vperm.slane %v2463_v8, 6 }
 0x5a9   :  { %2070 = vmatmul.msk.f32.vlgmr.msra.gmra.mxu1 %vm146_vm6, %v681_v48 }
 0x5b5   :  { %v792_v50 = vpop.permute.xlu2 %791 }
 0x5b6   :  { %v799_v54 = vsel %vm678_vm14, %v798_v53, %v792_v50 }
 0x5c7   :  { %v796_v55 = vpop.permute.xlu1 %795 }
 0x5c8   :  { %v800_v56 = vsel %vm680_vm15, %v799_v54, %v796_v55  ;;  %v1016_v54 = vld [vmem:[%s2970_s7 + $0x38] sm:$0xff] }
 0x5c9   :  { %2071 = vmatmul.msk.f32.gmra.mxu1 %vm146_vm6, %v800_v56  ;;  %1033 = vmatpush.msrb.mxu2 %v1016_v54 }
 0x626   :  { %v829_v58 = vpop.f32.mrf.mxu1 }
 0x627   :  { %v830_v59 = vadd.f32 %v829_v58, %v805_v57 }
 0x629   :  { %v835_v60 = vadd.f32 %v830_v59, %v2467_v21 }
 0x62b   :  { %v837_v29 = vsel %vm146_vm6, %v835_v60, 0.0 }
 0x62c   :  { %838 = vadd.xlane.f32.xlu2 %v837_v29 }
 0x646   :  { %v832_v61 = vpop.f32.mrf.mxu1 }
 0x647   :  { %v833_v63 = vadd.f32 %v832_v61, %v805_v57  ;;  %v1015_v57 = vld [vmem:[%s2970_s7 + $0x30] sm:$0xff] }
 0x648   :  { %1034 = vmatpush.msrb.mxu2 %v1015_v57 }
 0x649   :  { %v836_v1 = vadd.f32 %v833_v63, %v2471_v26  ;;  %v890_v26 = vld [vmem:[%s2969_s6 + $0x18] sm:$0xff]  ;;  %v1013_v63 = vld [vmem:[%s2970_s7 + $0x20] sm:$0xff] }
 0x64a   :  { %910 = vmatpush.msra.mxu3 %v890_v26 }
 0x64b   :  { %v840_v0 = vsel %vm146_vm6, %v836_v1, 0.0 }
 0x64c   :  { %841 = vadd.xlane.f32.xlu0 %v840_v0  ;;  %911 = vmatpush.msra.mxu3 %v889_v11  ;;  %v1012_v0 = vld [vmem:[%s2970_s7 + $0x18] sm:$0xff] }
 0x64e   :  { %912 = vmatpush.msra.mxu3 %v888_v12 }
 0x650   :  { %913 = vmatpush.msra.mxu3 %v887_v13 }
 0x69f   :  { %v839_v2 = vpop.xlane.xlu2 %838 }
 0x6a0   :  { %v843_v3 = vmul.f32 %v839_v2, %v2440_v47 }
 0x6a2   :  { %v845_v4 = vsub.f32 %v835_v60, %v843_v3  ;;  %v1014_v60 = vld [vmem:[%s2970_s7 + $0x28] sm:$0xff] }
 0x6a3   :  { %1035 = vmatpush.msrb.mxu2 %v1014_v60 }
 0x6a4   :  { %v847_v5 = vmul.f32 %v845_v4, %v845_v4 }
 0x6a5   :  { %1036 = vmatpush.msrb.mxu2 %v1013_v63 }
 0x6a6   :  { %v849_v6 = vsel %vm146_vm6, %v847_v5, 0.0 }
 0x6a7   :  { %850 = vadd.xlane.f32.xlu1 %v849_v6  ;;  %1037 = vmatpush.msrb.mxu2 %v1012_v0  ;;  %v1010_v6 = vld [vmem:[%s2970_s7 + $0x8] sm:$0xff] }
 0x6bf   :  { %v842_v7 = vpop.xlane.xlu0 %841 }
 0x6c0   :  { %v844_v21 = vmul.f32 %v842_v7, %v2440_v47 }
 0x6c2   :  { %v846_v31 = vsub.f32 %v836_v1, %v844_v21 }
 0x6c4   :  { %v848_v9 = vmul.f32 %v846_v31, %v846_v31 }
 0x6c6   :  { %v852_v10 = vsel %vm146_vm6, %v848_v9, 0.0 }
 0x6c7   :  { %853 = vadd.xlane.f32.xlu2 %v852_v10 }
 0x71a   :  { %v851_v14 = vpop.xlane.xlu1 %850 }
 0x71b   :  { %v855_v15 = vmul.f32 %v851_v14, %v2440_v47 }
 0x71d   :  { %v857_v16 = vadd.f32 1e-12, %v855_v15 }
 0x71f   :  { %2196 = vrsqrt.f32 %v857_v16  ;;  %vm865_vm2 = vweird.f32 %v857_v16 }
 0x725   :  { %v2197_v17 = vpop.eup %2196 }
 0x726   :  { %v860_v18 = vmul.f32 %v2197_v17, %v857_v16  ;;  %vm866_vm1 = vweird.f32 %v2197_v17 }
 0x727   :  { %vm867_vm3 = vmor %vm865_vm2, %vm866_vm1 }
 0x728   :  { %v861_v19 = vmul.f32 %v2197_v17, %v860_v18 }
 0x72a   :  { %v862_v20 = vmul.f32 0.5, %v861_v19 }
 0x72c   :  { %v863_v22 = vsub.f32 1.5, %v862_v20 }
 0x72e   :  { %v864_v23 = vmul.f32 %v2197_v17, %v863_v22 }
 0x730   :  { %v868_v25 = vsel %vm867_vm3, %v2197_v17, %v864_v23 }
 0x731   :  { %v879_v27 = vmul.f32 %v868_v25, %v845_v4  ;;  %v1011_v4 = vld [vmem:[%s2970_s7 + $0x10] sm:$0xff] }
 0x732   :  { %1038 = vmatpush.msrb.mxu2 %v1011_v4 }
 0x733   :  { %v882_v30 = vmul.f32 %v881_v24, %v879_v27 }
 0x734   :  { %1039 = vmatpush.msrb.mxu2 %v1010_v6 }
 0x735   :  { %v2643_v32 = vadd.f32 %v884_v28, %v882_v30 }
 0x737   :  { %2072 = vmatmul.msk.f32.vlgmr.msra.gmra.mxu3 %vm146_vm6, %v2643_v32 }
 0x73a   :  { %v854_v33 = vpop.xlane.xlu2 %853 }
 0x73b   :  { %v856_v34 = vmul.f32 %v854_v33, %v2440_v47 }
 0x73d   :  { %v858_v35 = vadd.f32 1e-12, %v856_v34 }
 0x73f   :  { %2198 = vrsqrt.f32 %v858_v35  ;;  %vm875_vm5 = vweird.f32 %v858_v35 }
 0x745   :  { %v2199_v36 = vpop.eup %2198 }
 0x746   :  { %v870_v37 = vmul.f32 %v2199_v36, %v858_v35  ;;  %vm876_vm4 = vweird.f32 %v2199_v36 }
 0x747   :  { %vm877_vm7 = vmor %vm875_vm5, %vm876_vm4 }
 0x748   :  { %v871_v38 = vmul.f32 %v2199_v36, %v870_v37 }
 0x74a   :  { %v872_v39 = vmul.f32 0.5, %v871_v38 }
 0x74c   :  { %v873_v40 = vsub.f32 1.5, %v872_v39 }
 0x74e   :  { %v874_v41 = vmul.f32 %v2199_v36, %v873_v40 }
 0x750   :  { %v878_v42 = vsel %vm877_vm7, %v2199_v36, %v874_v41 }
 0x751   :  { %v880_v43 = vmul.f32 %v878_v42, %v846_v31  ;;  %v1009_v31 = vld [vmem:[%s2970_s7] sm:$0xff] }
 0x752   :  { %1040 = vmatpush.msrb.mxu2 %v1009_v31 }
 0x753   :  { %v883_v44 = vmul.f32 %v881_v24, %v880_v43 }
 0x755   :  { %v2648_v45 = vadd.f32 %v884_v28, %v883_v44 }
 0x757   :  { %2073 = vmatmul.msk.f32.gmra.mxu3 %vm146_vm6, %v2648_v45 }
 0x7ba   :  { %v915_v48 = vpop.f32.mrf.mxu3 }
 0x7bb   :  { %v2653_v49 = vadd.f32 %v915_v48, %v891_v46 }
 0x7bd   :  { %v923_v50 = vmul.f32 0.70710677, %v2653_v49 }
 0x7bf   :  { %v925_v52 = vmul.f32 %v923_v50, %v923_v50 }
 0x7c1   :  { %v926_v53 = vmin.f32 %v925_v52, 16.0 }
 0x7c3   :  { %v927_v55 = vmul.f32 2.1237322e-06, %v926_v53  ;;  %v938_v56 = vmul.f32 3.8918573e-05, %v926_v53 }
 0x7c5   :  { %v928_v58 = vadd.f32 0.00028619796, %v927_v55  ;;  %v939_v59 = vadd.f32 0.001143296, %v938_v56 }
 0x7c7   :  { %v929_v29 = vmul.f32 %v928_v58, %v926_v53  ;;  %v940_v61 = vmul.f32 %v939_v59, %v926_v53 }
 0x7c9   :  { %v941_v1 = vadd.f32 0.014752088, %v940_v61  ;;  %v930_v2 = vadd.f32 0.0036580483, %v929_v29 }
 0x7cb   :  { %v942_v3 = vmul.f32 %v941_v1, %v926_v53  ;;  %v931_v7 = vmul.f32 %v930_v2, %v926_v53 }
 0x7cd   :  { %v943_v5 = vadd.f32 0.112945676, %v942_v3  ;;  %v932_v10 = vadd.f32 0.05243302, %v931_v7 }
 0x7cf   :  { %v944_v21 = vmul.f32 %v943_v5, %v926_v53  ;;  %v933_v12 = vmul.f32 %v932_v10, %v926_v53 }
 0x7d1   :  { %v945_v9 = vadd.f32 0.4994258, %v944_v21  ;;  %v934_v13 = vadd.f32 0.18741608, %v933_v12 }
 0x7d3   :  { %v946_v26 = vmul.f32 %v945_v9, %v926_v53  ;;  %v935_v18 = vmul.f32 %v934_v13, %v926_v53  ;;  %v921_v53 = vmul.f32 0.5, %v2653_v49 }
 0x7d5   :  { %v947_v11 = vadd.f32 1.0, %v946_v26  ;;  %v936_v25 = vadd.f32 1.1283791, %v935_v18 }
 0x7d7   :  { %2200 = vrcp.f32 %v947_v11  ;;  %v959_v23 = vand.u32 2147483648, %v947_v11  ;;  %v957_v28 = vand.u32 2147483647, %v947_v11  ;;  %vm953_vm9 = vweird.f32 %v947_v11 }
 0x7d8   :  { %v937_v38 = vmul.f32 %v936_v25, %v923_v50 }
 0x7d9   :  { %v960_v35 = vor.u32 1.1754944e-38, %v959_v23  ;;  %vm958_vm11 = vcmp.eq.f32.partialorder %v957_v28, 8.507059e+37 }
 0x7da   :  { %v918_v14 = vpop.f32.mrf.mxu3 }
 0x7db   :  { %v2680_v15 = vadd.f32 %v918_v14, %v891_v46 }
 0x7dd   :  { %v2201_v16 = vpop.eup %2200  ;;  %v924_v17 = vmul.f32 0.70710677, %v2680_v15  ;;  %v922_v12 = vmul.f32 0.5, %v2680_v15 }
 0x7de   :  { %v949_v19 = vmul.f32 %v2201_v16, %v947_v11  ;;  %vm954_vm8 = vweird.f32 %v2201_v16 }
 0x7df   :  { %v965_v20 = vmul.f32 %v924_v17, %v924_v17  ;;  %vm955_vm10 = vmor %vm953_vm9, %vm954_vm8 }
 0x7e0   :  { %v950_v22 = vsub.f32 1.0, %v949_v19 }
 0x7e1   :  { %v966_v24 = vmin.f32 %v965_v20, 16.0 }
 0x7e2   :  { %v951_v27 = vmul.f32 %v2201_v16, %v950_v22 }
 0x7e3   :  { %v967_v30 = vmul.f32 2.1237322e-06, %v966_v24  ;;  %v978_v33 = vmul.f32 3.8918573e-05, %v966_v24 }
 0x7e4   :  { %v952_v34 = vadd.f32 %v2201_v16, %v951_v27 }
 0x7e5   :  { %v968_v36 = vadd.f32 0.00028619796, %v967_v30  ;;  %v979_v37 = vadd.f32 0.001143296, %v978_v33 }
 0x7e6   :  { %v956_v39 = vsel %vm955_vm10, %v2201_v16, %v952_v34  ;;  %v1017_v16 = vperm.slane %v2463_v8, 7 }
 0x7e7   :  { %v961_v40 = vsel %vm958_vm11, %v960_v35, %v956_v39  ;;  %v969_v41 = vmul.f32 %v968_v36, %v966_v24  ;;  %v980_v42 = vmul.f32 %v979_v37, %v966_v24  ;;  %v2080_v37 = vld [vmem:[%s2967_s4 + $0x30] sm:$0xff]  ;;  %v2078_v39 = vld [vmem:[%s2967_s4 + $0x20] sm:$0xff] }
 0x7e8   :  { %v962_v43 = vmul.f32 %v961_v40, %v937_v38  ;;  %v2079_v38 = vld [vmem:[%s2967_s4 + $0x28] sm:$0xff] }
 0x7e9   :  { %v981_v44 = vadd.f32 0.014752088, %v980_v42  ;;  %v970_v48 = vadd.f32 0.0036580483, %v969_v41 }
 0x7ea   :  { %v2074_v46 = vclamps-f32 %v962_v43, 1.0 }
 0x7eb   :  { %v982_v52 = vmul.f32 %v981_v44, %v966_v24  ;;  %v971_v57 = vmul.f32 %v970_v48, %v966_v24 }
 0x7ec   :  { %v1005_v54 = vadd.f32 1.0, %v2074_v46 }
 0x7ed   :  { %v983_v55 = vadd.f32 0.112945676, %v982_v52  ;;  %v972_v59 = vadd.f32 0.05243302, %v971_v57  ;;  %v2712_v52 = vld [vmem:[%s2971_s8 + $0x8] sm:$0xff] }
 0x7ee   :  { %v1007_v56 = vmul.f32 %v1005_v54, %v921_v53 }
 0x7ef   :  { %v984_v58 = vmul.f32 %v983_v55, %v966_v24  ;;  %v973_v61 = vmul.f32 %v972_v59, %v966_v24  ;;  %v1094_v55 = vperm.slane %v2712_v52, 0 }
 0x7f0   :  { %2076 = vmatmul.msk.f32.vlgmr.msrb.gmra.mxu2 %vm1018_vm12, %v1007_v56 }
 0x7f1   :  { %v985_v50 = vadd.f32 0.4994258, %v984_v58  ;;  %v974_v63 = vadd.f32 0.18741608, %v973_v61  ;;  %v1097_v58 = vperm.slane %v2712_v52, 1 }
 0x7f3   :  { %v986_v60 = vmul.f32 %v985_v50, %v966_v24  ;;  %v975_v0 = vmul.f32 %v974_v63, %v966_v24 }
 0x7f5   :  { %v987_v29 = vadd.f32 1.0, %v986_v60  ;;  %v976_v4 = vadd.f32 1.1283791, %v975_v0 }
 0x7f7   :  { %2202 = vrcp.f32 %v987_v29  ;;  %v999_v49 = vand.u32 2147483648, %v987_v29  ;;  %v997_v6 = vand.u32 2147483647, %v987_v29  ;;  %vm993_vm1 = vweird.f32 %v987_v29 }
 0x7f8   :  { %v977_v31 = vmul.f32 %v976_v4, %v924_v17 }
 0x7f9   :  { %v1000_v21 = vor.u32 1.1754944e-38, %v999_v49  ;;  %vm998_vm3 = vcmp.eq.f32.partialorder %v997_v6, 8.507059e+37 }
 0x7fd   :  { %v2203_v1 = vpop.eup %2202 }
 0x7fe   :  { %v989_v2 = vmul.f32 %v2203_v1, %v987_v29  ;;  %vm994_vm13 = vweird.f32 %v2203_v1 }
 0x7ff   :  { %vm995_vm2 = vmor %vm993_vm1, %vm994_vm13 }
 0x800   :  { %v990_v3 = vsub.f32 1.0, %v989_v2 }
 0x802   :  { %v991_v5 = vmul.f32 %v2203_v1, %v990_v3 }
 0x804   :  { %v992_v7 = vadd.f32 %v2203_v1, %v991_v5 }
 0x806   :  { %v996_v9 = vsel %vm995_vm2, %v2203_v1, %v992_v7 }
 0x807   :  { %v1001_v10 = vsel %vm998_vm3, %v1000_v21, %v996_v9  ;;  %v1105_v21 = vperm.slane %v2712_v52, 2 }
 0x808   :  { %v1002_v26 = vmul.f32 %v1001_v10, %v977_v31 }
 0x80a   :  { %v2075_v11 = vclamps-f32 %v1002_v26, 1.0 }
 0x80c   :  { %v1006_v13 = vadd.f32 1.0, %v2075_v11 }
 0x80e   :  { %v1008_v14 = vmul.f32 %v1006_v13, %v922_v12 }
 0x810   :  { %2077 = vmatmul.msk.f32.gmra.mxu2 %vm1018_vm12, %v1008_v14 }
 0x873   :  { %v1042_v18 = vpop.f32.mrf.mxu2 }
 0x874   :  { %v1043_v19 = vadd.f32 %v1042_v18, %v1017_v16 }
 0x876   :  { %v1048_v20 = vadd.f32 %v1043_v19, %v2643_v32 }
 0x878   :  { %v1050_v22 = vsel %vm146_vm6, %v1048_v20, 0.0 }
 0x879   :  { %1051 = vadd.xlane.f32.xlu0 %v1050_v22 }
 0x893   :  { %v1045_v17 = vpop.f32.mrf.mxu2 }
 0x894   :  { %v1046_v23 = vadd.f32 %v1045_v17, %v1017_v16 }
 0x896   :  { %v1049_v24 = vadd.f32 %v1046_v23, %v2648_v45  ;;  %v2081_v45 = vld [vmem:[%s2967_s4 + $0x38] sm:$0xff] }
 0x897   :  { %1124 = vmatpush.msrb.mxu0 %v2081_v45 }
 0x898   :  { %v1053_v25 = vsel %vm146_vm6, %v1049_v24, 0.0 }
 0x899   :  { %1054 = vadd.xlane.f32.xlu2 %v1053_v25  ;;  %1125 = vmatpush.msrb.mxu0 %v2080_v37 }
 0x89b   :  { %1126 = vmatpush.msrb.mxu0 %v2079_v38 }
 0x89d   :  { %1127 = vmatpush.msrb.mxu0 %v2078_v39 }
 0x8ec   :  { %v1052_v15 = vpop.xlane.xlu0 %1051 }
 0x8ed   :  { %v1056_v27 = vmul.f32 %v1052_v15, %v2440_v47 }
 0x8ef   :  { %v1058_v28 = vsub.f32 %v1048_v20, %v1056_v27 }
 0x8f1   :  { %v1060_v30 = vmul.f32 %v1058_v28, %v1058_v28 }
 0x8f3   :  { %v1062_v8 = vsel %vm146_vm6, %v1060_v30, 0.0 }
 0x8f4   :  { %1063 = vadd.xlane.f32.xlu0 %v1062_v8 }
 0x90c   :  { %v1055_v33 = vpop.xlane.xlu2 %1054 }
 0x90d   :  { %v1057_v32 = vmul.f32 %v1055_v33, %v2440_v47 }
 0x90f   :  { %v1059_v34 = vsub.f32 %v1049_v24, %v1057_v32 }
 0x911   :  { %v1061_v35 = vmul.f32 %v1059_v34, %v1059_v34 }
 0x913   :  { %v1065_v36 = vsel %vm146_vm6, %v1061_v35, 0.0 }
 0x914   :  { %1066 = vadd.xlane.f32.xlu2 %v1065_v36 }
 0x967   :  { %v1064_v40 = vpop.xlane.xlu0 %1063 }
 0x968   :  { %v1068_v41 = vmul.f32 %v1064_v40, %v2440_v47 }
 0x96a   :  { %v1070_v42 = vadd.f32 1e-12, %v1068_v41 }
 0x96c   :  { %2204 = vrsqrt.f32 %v1070_v42  ;;  %vm1078_vm5 = vweird.f32 %v1070_v42 }
 0x972   :  { %v2205_v43 = vpop.eup %2204 }
 0x973   :  { %v1073_v44 = vmul.f32 %v2205_v43, %v1070_v42  ;;  %vm1079_vm4 = vweird.f32 %v2205_v43 }
 0x974   :  { %vm1080_vm7 = vmor %vm1078_vm5, %vm1079_vm4 }
 0x975   :  { %v1074_v46 = vmul.f32 %v2205_v43, %v1073_v44 }
 0x977   :  { %v1075_v48 = vmul.f32 0.5, %v1074_v46 }
 0x979   :  { %v1076_v53 = vsub.f32 1.5, %v1075_v48 }
 0x97b   :  { %v1077_v54 = vmul.f32 %v2205_v43, %v1076_v53 }
 0x97d   :  { %v1081_v56 = vsel %vm1080_vm7, %v2205_v43, %v1077_v54 }
 0x97e   :  { %v1092_v57 = vmul.f32 %v1081_v56, %v1058_v28 }
 0x980   :  { %v1095_v50 = vmul.f32 %v1094_v55, %v1092_v57 }
 0x982   :  { %v2716_v59 = vadd.f32 %v1097_v58, %v1095_v50 }
 0x984   :  { %2082 = vmatmul.msk.f32.vlgmr.msrb.gmra.mxu0 %vm146_vm6, %v2716_v59 }
 0x987   :  { %v1067_v60 = vpop.xlane.xlu2 %1066 }
 0x988   :  { %v1069_v29 = vmul.f32 %v1067_v60, %v2440_v47 }
 0x98a   :  { %v1071_v61 = vadd.f32 1e-12, %v1069_v29 }
 0x98c   :  { %2206 = vrsqrt.f32 %v1071_v61  ;;  %vm1088_vm9 = vweird.f32 %v1071_v61 }
 0x992   :  { %v2207_v63 = vpop.eup %2206 }
 0x993   :  { %v1083_v1 = vmul.f32 %v2207_v63, %v1071_v61  ;;  %vm1089_vm8 = vweird.f32 %v2207_v63 }
 0x994   :  { %vm1090_vm10 = vmor %vm1088_vm9, %vm1089_vm8 }
 0x995   :  { %v1084_v0 = vmul.f32 %v2207_v63, %v1083_v1 }
 0x997   :  { %v1085_v2 = vmul.f32 0.5, %v1084_v0 }
 0x999   :  { %v1086_v3 = vsub.f32 1.5, %v1085_v2 }
 0x99b   :  { %v1087_v49 = vmul.f32 %v2207_v63, %v1086_v3 }
 0x99d   :  { %v1091_v4 = vsel %vm1090_vm10, %v2207_v63, %v1087_v49 }
 0x99e   :  { %v1093_v5 = vmul.f32 %v1091_v4, %v1059_v34 }
 0x9a0   :  { %v1096_v6 = vmul.f32 %v1094_v55, %v1093_v5 }
 0x9a2   :  { %v2721_v7 = vadd.f32 %v1097_v58, %v1096_v6 }
 0x9a4   :  { %2083 = vmatmul.msk.f32.gmra.mxu0 %vm146_vm6, %v2721_v7 }
 0xa01   :  { %v1129_v31 = vpop.f32.mrf.mxu0 }
 0xa02   :  { %v2726_v9 = vadd.f32 %v1129_v31, %v1105_v21 }
 0xa04   :  { %1136 = vrot.lane.b32.xlu1 %v2726_v9, %s2308_s17  ;;  %1164 = vrot.lane.b32.xlu0 %v2726_v9, %s2310_s19 }
 0xa05   :  { %1162 = vrot.lane.b32.xlu2 %v2726_v9, %s2311_s20 }
 0xa0c   :  { %1220 = vrot.lane.b32.xlu1 %v2726_v9, %s2312_s21 }
 0xa0d   :  { %1192 = vrot.lane.b32.xlu2 %v2726_v9, %s2309_s18 }
 0xa15   :  { %1218 = vrot.lane.b32.xlu2 %v2726_v9, %s2307_s16 }
 0xa21   :  { %v1132_v10 = vpop.f32.mrf.mxu0 }
 0xa22   :  { %v2740_v26 = vadd.f32 %v1132_v10, %v1105_v21 }
 0xa24   :  { %1301 = vrot.lane.b32.xlu2 %v2740_v26, %s2314_s23  ;;  %1303 = vrot.lane.b32.xlu1 %v2740_v26, %s2309_s18 }
 0xa25   :  { %1275 = vrot.lane.b32.xlu0 %v2740_v26, %s2310_s19 }
 0xa2c   :  { %1329 = vrot.lane.b32.xlu1 %v2740_v26, %s2307_s16 }
 0xa2d   :  { %1273 = vrot.lane.b32.xlu0 %v2740_v26, %s2311_s20 }
 0xa35   :  { %1190 = vrot.lane.b32.xlu0 %v2726_v9, %s2314_s23  ;;  %s2321_s23 = smov [#allocation2]  }
 0xa3d   :  { %1331 = vrot.lane.b32.xlu0 %v2740_v26, %s2312_s21 }
 0xa45   :  { %1247 = vrot.lane.b32.xlu0 %v2740_v26, %s2308_s17 }
 0xa5f   :  { %v1163_v11 = vpop.permute.xlu2 %1162 }
 0xa67   :  { %v1193_v12 = vpop.permute.xlu2 %1192 }
 0xa68   :  { %2088 = vmatpush.xpose.msk.msra.mxu0 %vm84_vm0, %v1193_v12 }
 0xa6f   :  { %v1219_v18 = vpop.permute.xlu2 %1218 }
 0xa76   :  { %v1137_v13 = vpop.permute.xlu1 %1136  ;;  %v1165_v14 = vpop.permute.xlu0 %1164 }
 0xa77   :  { %2084 = vmatpush.xpose.msk.msrb.mxu1 %vm84_vm0, %v1137_v13  ;;  %2086 = vmatpush.xpose.msk.msrb.mxu3 %vm84_vm0, %v1165_v14 }
 0xa7a   :  { %2085 = vmatmul.msk.f32.vlgmr.msrb.gmra.mxu1 %vm84_vm0, %v2726_v9  ;;  %2087 = vmatmul.msk.f32.vlgmr.msrb.gmra.mxu3 %vm84_vm0, %v1163_v11 }
 0xa7e   :  { %v1221_v16 = vpop.permute.xlu1 %1220  ;;  %v1302_v23 = vpop.permute.xlu2 %1301 }
 0xa7f   :  { %2090 = vmatpush.xpose.msk.msra.mxu1 %vm84_vm0, %v1221_v16 }
 0xa82   :  { %2091 = vmatmul.msk.f32.vlgmr.msra.gmra.mxu1 %vm84_vm0, %v1219_v18 }
 0xa96   :  { %v1304_v19 = vpop.permute.xlu1 %1303 }
 0xa97   :  { %v1276_v20 = vpop.permute.xlu0 %1275  ;;  %2096 = vmatpush.xpose.msk.msrb.mxu0 %vm84_vm0, %v1304_v19 }
 0xa98   :  { %2094 = vmatpush.xpose.msk.msra.mxu2 %vm84_vm0, %v1276_v20 }
 0xa9e   :  { %v1330_v25 = vpop.permute.xlu1 %1329 }
 0xa9f   :  { %v1274_v22 = vpop.permute.xlu0 %1273 }
 0xaa0   :  { %2095 = vmatmul.msk.f32.vlgmr.msra.gmra.mxu2 %vm84_vm0, %v1274_v22 }
 0xaa7   :  { %v1191_v17 = vpop.permute.xlu0 %1190 }
 0xaa8   :  { %2089 = vmatmul.msk.f32.vlgmr.msra.gmra.mxu0 %vm84_vm0, %v1191_v17 }
 0xaaf   :  { %v1332_v24 = vpop.permute.xlu0 %1331 }
 0xab0   :  { %2097 = vmatmul.msk.f32.vlgmr.msrb.gmra.mxu0 %vm84_vm0, %v1302_v23  ;;  %2098 = vmatpush.xpose.msk.msrb.mxu1 %vm84_vm0, %v1332_v24 }
 0xab3   :  { %2099 = vmatmul.msk.f32.vlgmr.msrb.gmra.mxu1 %vm84_vm0, %v1330_v25 }
 0xab7   :  { %v1248_v15 = vpop.permute.xlu0 %1247 }
 0xab8   :  { %2092 = vmatpush.xpose.msk.msra.mxu3 %vm84_vm0, %v1248_v15 }
 0xabb   :  { %2093 = vmatmul.msk.f32.vlgmr.msra.gmra.mxu3 %vm84_vm0, %v2740_v26 }
 0xaf7   :  { %v1159_v27 = vpop.f32.mrf.mxu1 }
 0xaf8   :  { %v2777_v28 = vadd.f32 %v1159_v27, %v2531_v51 }
 0xafa   :  { %v1365_v30 = vsel %vm84_vm0, %v2777_v28, -inf }
 0xafb   :  { %1366 = vmax.xlane.f32.xlu2 %v1365_v30 }
 0xafd   :  { %v1187_v8 = vpop.f32.mrf.mxu3 }
 0xafe   :  { %v1358_v33 = vadd.f32 %v1187_v8, %v2531_v51 }
 0xaff   :  { %v1243_v32 = vpop.f32.mrf.mxu1 }
 0xb00   :  { %v1360_v34 = vadd.f32 %v1243_v32, %v2531_v51  ;;  %v1368_v35 = vsel %vm84_vm0, %v1358_v33, -inf }
 0xb02   :  { %v1374_v36 = vsel %vm84_vm0, %v1360_v34, -inf }
 0xb03   :  { %1369 = vmax.xlane.f32.xlu2 %v1368_v35  ;;  %1375 = vmax.xlane.f32.xlu0 %v1374_v36 }
 0xb23   :  { %v1298_v45 = vpop.f32.mrf.mxu2 }
 0xb24   :  { %v1362_v37 = vadd.f32 %v1298_v45, %v2539_v62 }
 0xb25   :  { %v1215_v38 = vpop.f32.mrf.mxu0 }
 0xb26   :  { %v1359_v39 = vadd.f32 %v1215_v38, %v2531_v51  ;;  %v1380_v40 = vsel %vm84_vm0, %v1362_v37, -inf }
 0xb27   :  { %1381 = vmax.xlane.f32.xlu2 %v1380_v40 }
 0xb28   :  { %v1371_v41 = vsel %vm84_vm0, %v1359_v39, -inf }
 0xb29   :  { %1372 = vmax.xlane.f32.xlu1 %v1371_v41 }
 0xb2d   :  { %v1326_v42 = vpop.f32.mrf.mxu0 }
 0xb2e   :  { %v1363_v43 = vadd.f32 %v1326_v42, %v2539_v62 }
 0xb30   :  { %v1354_v44 = vpop.f32.mrf.mxu1  ;;  %v1383_v46 = vsel %vm84_vm0, %v1363_v43, -inf }
 0xb31   :  { %v1364_v48 = vadd.f32 %v1354_v44, %v2539_v62  ;;  %1384 = vmax.xlane.f32.xlu1 %v1383_v46 }
 0xb33   :  { %v1386_v53 = vsel %vm84_vm0, %v1364_v48, -inf }
 0xb34   :  { %1387 = vmax.xlane.f32.xlu0 %v1386_v53 }
 0xb3e   :  { %v1270_v54 = vpop.f32.mrf.mxu3 }
 0xb3f   :  { %v1361_v51 = vadd.f32 %v1270_v54, %v2539_v62  ;;  %1479 = vrot.lane.b32.xlu2 %v2726_v9, %s2316_s26 }
 0xb41   :  { %v1377_v55 = vsel %vm84_vm0, %v1361_v51, -inf }
 0xb42   :  { %1378 = vmax.xlane.f32.xlu1 %v1377_v55 }
 0xb6e   :  { %v1367_v56 = vpop.xlane.xlu2 %1366 }
 0xb6f   :  { %v1389_v27 = vsub.f32 %v2777_v28, %v1367_v56 }
 0xb71   :  { %v1397_v8 = vmul.f32 1.442695, %v1389_v27 }
 0xb76   :  { %v1376_v57 = vpop.xlane.xlu0 %1375  ;;  %v1370_v58 = vpop.xlane.xlu2 %1369 }
 0xb77   :  { %v1392_v50 = vsub.f32 %v1360_v34, %v1376_v57  ;;  %v1390_v60 = vsub.f32 %v1358_v33, %v1370_v58 }
 0xb79   :  { %v1403_v29 = vmul.f32 1.442695, %v1392_v50  ;;  %v1399_v61 = vmul.f32 1.442695, %v1390_v60 }
 0xb7b   :  { %2208 = vpow2.f32 %v1403_v29 }
 0xb7c   :  { %2210 = vpow2.f32 %v1399_v61 }
 0xb81   :  { %v2797_v63 = vpop.eup %2208 }
 0xb82   :  { %v2211_v1 = vpop.eup %2210  ;;  %v1422_v62 = vsel %vm84_vm0, %v2797_v63, 0.0 }
 0xb83   :  { %1423 = vadd.xlane.f32.xlu1 %v1422_v62  ;;  %v1416_v0 = vsel %vm84_vm0, %v2211_v1, 0.0 }
 0xb84   :  { %1417 = vadd.xlane.f32.xlu0 %v1416_v0 }
 0xb98   :  { %1531 = vrot.lane.b32.xlu0 %v2726_v9, %s2317_s27 }
 0xb9a   :  { %v1382_v2 = vpop.xlane.xlu2 %1381 }
 0xb9b   :  { %v1394_v19 = vsub.f32 %v1362_v37, %v1382_v2 }
 0xb9c   :  { %v1373_v3 = vpop.xlane.xlu1 %1372 }
 0xb9d   :  { %v1391_v49 = vsub.f32 %v1359_v39, %v1373_v3  ;;  %v1407_v20 = vmul.f32 1.442695, %v1394_v19 }
 0xb9f   :  { %v1401_v4 = vmul.f32 1.442695, %v1391_v49 }
 0xba0   :  { %1650 = vrot.lane.b32.xlu0 %v2740_v26, %s2317_s27 }
 0xba1   :  { %2212 = vpow2.f32 %v1401_v4 }
 0xba2   :  { %v1480_v5 = vpop.permute.xlu2 %1479 }
 0xba3   :  { %1500 = vmatpush.msrb.mxu2 %v1480_v5 }
 0xba4   :  { %v1385_v6 = vpop.xlane.xlu1 %1384 }
 0xba5   :  { %v1395_v21 = vsub.f32 %v1363_v43, %v1385_v6 }
 0xba7   :  { %v2213_v31 = vpop.eup %2212  ;;  %v1409_v10 = vmul.f32 1.442695, %v1395_v21  ;;  %v1388_v14 = vpop.xlane.xlu0 %1387 }
 0xba8   :  { %v1419_v11 = vsel %vm84_vm0, %v2213_v31, 0.0  ;;  %v1396_v16 = vsub.f32 %v1364_v48, %v1388_v14 }
 0xba9   :  { %2214 = vpow2.f32 %v1409_v10  ;;  %1420 = vadd.xlane.f32.xlu2 %v1419_v11  ;;  %v2110_v10 = vld [vmem:[%s2968_s5 + $0x30] sm:$0xff]  ;;  %v2109_v11 = vld [vmem:[%s2968_s5 + $0x28] sm:$0xff] }
 0xbaa   :  { %v1411_v18 = vmul.f32 1.442695, %v1396_v16 }
 0xbac   :  { %2216 = vpow2.f32 %v1411_v18 }
 0xbad   :  { %2218 = vpow2.f32 %v1407_v20 }
 0xbaf   :  { %v2807_v12 = vpop.eup %2214 }
 0xbb0   :  { %v1431_v13 = vsel %vm84_vm0, %v2807_v12, 0.0 }
 0xbb1   :  { %1432 = vadd.xlane.f32.xlu1 %v1431_v13 }
 0xbb2   :  { %v2217_v22 = vpop.eup %2216 }
 0xbb3   :  { %v1434_v17 = vsel %vm84_vm0, %v2217_v22, 0.0  ;;  %v2219_v23 = vpop.eup %2218 }
 0xbb4   :  { %v1428_v24 = vsel %vm84_vm0, %v2219_v23, 0.0 }
 0xbb5   :  { %v1379_v25 = vpop.xlane.xlu1 %1378 }
 0xbb6   :  { %v1393_v15 = vsub.f32 %v1361_v51, %v1379_v25 }
 0xbb8   :  { %v1405_v30 = vmul.f32 1.442695, %v1393_v15 }
 0xbba   :  { %2220 = vpow2.f32 %v1405_v30 }
 0xbbb   :  { %2222 = vpow2.f32 %v1397_v8  ;;  %v1696_v8 = vperm.slane %v2712_v52, 3 }
 0xbc0   :  { %v2221_v33 = vpop.eup %2220 }
 0xbc1   :  { %1598 = vrot.lane.b32.xlu2 %v2740_v26, %s2316_s26  ;;  %v2223_v32 = vpop.eup %2222  ;;  %v1425_v34 = vsel %vm84_vm0, %v2221_v33, 0.0  ;;  %s2322_s26 = smov [#allocation4]  }
 0xbc2   :  { %v1413_v35 = vsel %vm84_vm0, %v2223_v32, 0.0  ;;  %s2020_s27 = sshll.u32 %s2322_s26, 4  ;;  %s2021_s27 = int_to_ptr.vmem [resolvable:$true] %s2020_s27 }
 0xbc9   :  { %1624 = vrot.lane.b32.xlu2 %v2740_v26, %s2315_s2 }
 0xbca   :  { %1505 = vrot.lane.b32.xlu1 %v2726_v9, %s2315_s2  ;;  %1435 = vadd.xlane.f32.xlu0 %v1434_v17  ;;  %s2006_s2 = sshll.u32 %s2321_s23, 4  ;;  %s2007_s2 = int_to_ptr.vmem [resolvable:$true] %s2006_s2 }
 0xbd2   :  { %1429 = vadd.xlane.f32.xlu0 %v1428_v24 }
 0xbe6   :  { %1453 = vrot.lane.b32.xlu0 %v2726_v9, %s2313_s22 }
 0xbee   :  { %1572 = vrot.lane.b32.xlu0 %v2740_v26, %s2313_s22 }
 0xbf2   :  { %1426 = vadd.xlane.f32.xlu2 %v1425_v34 }
 0xbf4   :  { %1414 = vadd.xlane.f32.xlu1 %v1413_v35 }
 0xbf6   :  { %v1424_v45 = vpop.xlane.xlu1 %1423 }
 0xbf7   :  { %v1418_v36 = vpop.xlane.xlu0 %1417 }
 0xbf8   :  { %2224 = vrcp.f32 %v1418_v36 }
 0xbf9   :  { %2226 = vrcp.f32 %v1424_v45 }
 0xbfe   :  { %v2225_v28 = vpop.eup %2224 }
 0xbff   :  { %v1446_v37 = vmul.f32 %v2225_v28, %v2211_v1  ;;  %v2227_v9 = vpop.eup %2226 }
 0xc00   :  { %v1448_v38 = vmul.f32 %v2227_v9, %v2797_v63 }
 0xc01   :  { %2101 = vmatmul.msk.f32.vlgmr.msrb.gmra.mxu2 %vm84_vm0, %v1446_v37 }
 0xc0a   :  { %v1532_v39 = vpop.permute.xlu0 %1531 }
 0xc0b   :  { %1552 = vmatpush.msra.mxu1 %v1532_v39 }
 0xc0c   :  { %2103 = vmatmul.msk.f32.vlgmr.msra.gmra.mxu1 %vm84_vm0, %v1448_v38 }
 0xc12   :  { %v1651_v26 = vpop.permute.xlu0 %1650 }
 0xc13   :  { %1671 = vmatpush.msrb.mxu1 %v1651_v26 }
 0xc1c   :  { %v1421_v40 = vpop.xlane.xlu2 %1420 }
 0xc1d   :  { %2228 = vrcp.f32 %v1421_v40 }
 0xc23   :  { %v2229_v43 = vpop.eup %2228 }
 0xc24   :  { %v1599_v41 = vpop.permute.xlu2 %1598  ;;  %v1433_v42 = vpop.xlane.xlu1 %1432  ;;  %v1447_v44 = vmul.f32 %v2229_v43, %v2213_v31  ;;  %v2111_v31 = vld [vmem:[%s2968_s5 + $0x38] sm:$0xff] }
 0xc25   :  { %1619 = vmatpush.msra.mxu2 %v1599_v41  ;;  %2230 = vrcp.f32 %v1433_v42 }
 0xc2b   :  { %v2231_v54 = vpop.eup %2230 }
 0xc2c   :  { %v1625_v53 = vpop.permute.xlu2 %1624  ;;  %v1451_v55 = vmul.f32 %v2231_v54, %v2807_v12  ;;  %v2108_v12 = vld [vmem:[%s2968_s5 + $0x20] sm:$0xff]  ;;  %s2008_s5 = sshll.u32 %s2972_s9, 4  ;;  %s2323_s9 = smov 128   ;;  %s2009_s5 = int_to_ptr.hbm [resolvable:$true] %s2008_s5 }
 0xc3c   :  { %v1506_v46 = vpop.permute.xlu1 %1505 }
 0xc3d   :  { %1526 = vmatpush.msra.mxu0 %v1506_v46  ;;  %v1436_v48 = vpop.xlane.xlu0 %1435  ;;  %v2116_v46 = vld [vmem:[%s2969_s6 + $0x30] sm:$0xff] }
 0xc3e   :  { %2232 = vrcp.f32 %v1436_v48  ;;  %2102 = vmatmul.msk.f32.vlgmr.msra.gmra.mxu0 %vm84_vm0, %v1447_v44  ;;  %v2115_v48 = vld [vmem:[%s2969_s6 + $0x28] sm:$0xff] }
 0xc3f   :  { %1645 = vmatpush.msrb.mxu0 %v1625_v53  ;;  %v2114_v53 = vld [vmem:[%s2969_s6 + $0x20] sm:$0xff] }
 0xc44   :  { %v2233_v51 = vpop.eup %2232 }
 0xc45   :  { %v1452_v56 = vmul.f32 %v2233_v51, %v2217_v22  ;;  %v1430_v57 = vpop.xlane.xlu0 %1429 }
 0xc46   :  { %2234 = vrcp.f32 %v1430_v57  ;;  %2106 = vmatmul.msk.f32.vlgmr.msrb.gmra.mxu0 %vm84_vm0, %v1451_v55 }
 0xc47   :  { %2107 = vmatmul.msk.f32.vlgmr.msrb.gmra.mxu1 %vm84_vm0, %v1452_v56 }
 0xc4c   :  { %v2235_v58 = vpop.eup %2234 }
 0xc4d   :  { %v1450_v50 = vmul.f32 %v2235_v58, %v2219_v23 }
 0xc4f   :  { %2105 = vmatmul.msk.f32.vlgmr.msra.gmra.mxu2 %vm84_vm0, %v1450_v50 }
 0xc58   :  { %v1454_v60 = vpop.permute.xlu0 %1453 }
 0xc59   :  { %1474 = vmatpush.msrb.mxu3 %v1454_v60 }
 0xc60   :  { %v1573_v29 = vpop.permute.xlu0 %1572 }
 0xc61   :  { %1593 = vmatpush.msra.mxu3 %v1573_v29 }
 0xc65   :  { %v1427_v63 = vpop.xlane.xlu2 %1426 }
 0xc67   :  { %v1415_v61 = vpop.xlane.xlu1 %1414 }
 0xc68   :  { %2236 = vrcp.f32 %v1415_v61 }
 0xc69   :  { %2238 = vrcp.f32 %v1427_v63 }
 0xc6e   :  { %v2237_v1 = vpop.eup %2236 }
 0xc6f   :  { %v1445_v62 = vmul.f32 %v2237_v1, %v2223_v32  ;;  %v2239_v0 = vpop.eup %2238 }
 0xc70   :  { %v1449_v2 = vmul.f32 %v2239_v0, %v2221_v33  ;;  %v1772_v0 = vperm.slane %v2712_v52, 4 }
 0xc71   :  { %2100 = vmatmul.msk.f32.vlgmr.msrb.gmra.mxu3 %vm84_vm0, %v1445_v62 }
 0xc72   :  { %1715 = vmatpush.msrb.mxu3 %v2111_v31 }
 0xc74   :  { %1716 = vmatpush.msrb.mxu3 %v2110_v10 }
 0xc76   :  { %1717 = vmatpush.msrb.mxu3 %v2109_v11 }
 0xc78   :  { %1718 = vmatpush.msrb.mxu3 %v2108_v12 }
 0xc79   :  { %2104 = vmatmul.msk.f32.vlgmr.msra.gmra.mxu3 %vm84_vm0, %v1449_v2 }
 0xc84   :  { %v1502_v49 = vpop.f32.mrf.mxu2 }
 0xc89   :  { %v1554_v5 = vpop.f32.mrf.mxu1 }
 0xcbb   :  { %v1528_v3 = vpop.f32.mrf.mxu0 }
 0xcbc   :  { %1562 = vrot.lane.b32.xlu0 %v1528_v3, %s2318_s28 }
 0xcc3   :  { %v1647_v4 = vpop.f32.mrf.mxu0 }
 0xcc4   :  { %1558 = vrot.lane.b32.xlu0 %v1502_v49, %s2319_s3  ;;  %1681 = vrot.lane.b32.xlu2 %v1647_v4, %s2318_s28  ;;  %v1673_v21 = vpop.f32.mrf.mxu1 }
 0xccc   :  { %1566 = vrot.lane.b32.xlu0 %v1554_v5, %s2320_s29  ;;  %v1775_v5 = vperm.slane %v2712_v52, 5 }
 0xcd2   :  { %v1621_v6 = vpop.f32.mrf.mxu2 }
 0xcd3   :  { %1677 = vrot.lane.b32.xlu1 %v1621_v6, %s2319_s3 }
 0xcd4   :  { %1685 = vrot.lane.b32.xlu0 %v1673_v21, %s2320_s29 }
 0xcf4   :  { %v1476_v16 = vpop.f32.mrf.mxu3 }
 0xcfc   :  { %v1595_v17 = vpop.f32.mrf.mxu3 }
 0xd1e   :  { %v1682_v24 = vpop.permute.xlu2 %1681 }
 0xd2e   :  { %v1563_v13 = vpop.permute.xlu0 %1562 }
 0xd36   :  { %v1559_v14 = vpop.permute.xlu0 %1558 }
 0xd37   :  { %v1569_v18 = vsel %vm84_vm0, %v1476_v16, %v1559_v14 }
 0xd38   :  { %v1570_v19 = vsel %vm678_vm14, %v1569_v18, %v1563_v13  ;;  %v1783_v18 = vperm.slane %v2712_v52, 6 }
 0xd3e   :  { %v1567_v20 = vpop.permute.xlu0 %1566 }
 0xd3f   :  { %v1571_v22 = vsel %vm680_vm15, %v1570_v19, %v1567_v20 }
 0xd40   :  { %2112 = vmatmul.msk.f32.vlgmr.msrb.gmra.mxu3 %vm146_vm6, %v1571_v22 }
 0xd45   :  { %v1678_v23 = vpop.permute.xlu1 %1677 }
 0xd46   :  { %v1688_v25 = vsel %vm84_vm0, %v1595_v17, %v1678_v23  ;;  %v1686_v15 = vpop.permute.xlu0 %1685 }
 0xd47   :  { %v1689_v27 = vsel %vm678_vm14, %v1688_v25, %v1682_v24  ;;  %v2129_v24 = vld [vmem:[%s2970_s7 + $0x78] sm:$0xff] }
 0xd48   :  { %v1690_v30 = vsel %vm680_vm15, %v1689_v27, %v1686_v15  ;;  %1925 = vmatpush.msra.mxu0 %v2129_v24 }
 0xd49   :  { %2113 = vmatmul.msk.f32.gmra.mxu3 %vm146_vm6, %v1690_v30  ;;  %v2128_v30 = vld [vmem:[%s2970_s7 + $0x70] sm:$0xff] }
 0xd4a   :  { %1926 = vmatpush.msra.mxu0 %v2128_v30 }
 0xdc3   :  { %v1720_v33 = vpop.f32.mrf.mxu3 }
 0xdc4   :  { %v1721_v32 = vadd.f32 %v1720_v33, %v1696_v8 }
 0xdc6   :  { %v1726_v34 = vadd.f32 %v1721_v32, %v2716_v59 }
 0xdc8   :  { %v1728_v35 = vsel %vm146_vm6, %v1726_v34, 0.0 }
 0xdc9   :  { %1729 = vadd.xlane.f32.xlu0 %v1728_v35 }
 0xdcc   :  { %v1723_v36 = vpop.f32.mrf.mxu3 }
 0xdcd   :  { %v1724_v28 = vadd.f32 %v1723_v36, %v1696_v8 }
 0xdcf   :  { %v1727_v45 = vadd.f32 %v1724_v28, %v2721_v7  ;;  %v2117_v7 = vld [vmem:[%s2969_s6 + $0x38] sm:$0xff] }
 0xdd0   :  { %1802 = vmatpush.msrb.mxu2 %v2117_v7 }
 0xdd1   :  { %v1731_v37 = vsel %vm146_vm6, %v1727_v45, 0.0 }
 0xdd2   :  { %1732 = vadd.xlane.f32.xlu1 %v1731_v37  ;;  %1803 = vmatpush.msrb.mxu2 %v2116_v46 }
 0xdd4   :  { %1804 = vmatpush.msrb.mxu2 %v2115_v48 }
 0xdd6   :  { %1805 = vmatpush.msrb.mxu2 %v2114_v53 }
 0xe3c   :  { %v1730_v9 = vpop.xlane.xlu0 %1729 }
 0xe3d   :  { %v1734_v38 = vmul.f32 %v1730_v9, %v2440_v47 }
 0xe3f   :  { %v1736_v39 = vsub.f32 %v1726_v34, %v1734_v38  ;;  %v2127_v34 = vld [vmem:[%s2970_s7 + $0x68] sm:$0xff]  ;;  %v2125_v38 = vld [vmem:[%s2970_s7 + $0x58] sm:$0xff] }
 0xe40   :  { %1927 = vmatpush.msra.mxu0 %v2127_v34 }
 0xe41   :  { %v1738_v26 = vmul.f32 %v1736_v39, %v1736_v39 }
 0xe43   :  { %v1740_v40 = vsel %vm146_vm6, %v1738_v26, 0.0 }
 0xe44   :  { %1741 = vadd.xlane.f32.xlu2 %v1740_v40 }
 0xe45   :  { %v1733_v41 = vpop.xlane.xlu1 %1732 }
 0xe46   :  { %v1735_v59 = vmul.f32 %v1733_v41, %v2440_v47  ;;  %v2124_v41 = vld [vmem:[%s2970_s7 + $0x50] sm:$0xff] }
 0xe48   :  { %v1737_v42 = vsub.f32 %v1727_v45, %v1735_v59  ;;  %v2126_v45 = vld [vmem:[%s2970_s7 + $0x60] sm:$0xff] }
 0xe49   :  { %1928 = vmatpush.msra.mxu0 %v2126_v45 }
 0xe4a   :  { %v1739_v43 = vmul.f32 %v1737_v42, %v1737_v42 }
 0xe4b   :  { %1929 = vmatpush.msra.mxu0 %v2125_v38 }
 0xe4c   :  { %v1743_v44 = vsel %vm146_vm6, %v1739_v43, 0.0 }
 0xe4d   :  { %1744 = vadd.xlane.f32.xlu0 %v1743_v44  ;;  %1930 = vmatpush.msra.mxu0 %v2124_v41  ;;  %v2123_v44 = vld [vmem:[%s2970_s7 + $0x48] sm:$0xff] }
 0xe4f   :  { %1931 = vmatpush.msra.mxu0 %v2123_v44 }
 0xeb7   :  { %v1742_v54 = vpop.xlane.xlu2 %1741 }
 0xeb8   :  { %v1746_v51 = vmul.f32 %v1742_v54, %v2440_v47  ;;  %v2122_v54 = vld [vmem:[%s2970_s7 + $0x40] sm:$0xff] }
 0xeb9   :  { %1932 = vmatpush.msra.mxu0 %v2122_v54 }
 0xeba   :  { %v1748_v55 = vadd.f32 1e-12, %v1746_v51 }
 0xebc   :  { %2240 = vrsqrt.f32 %v1748_v55  ;;  %vm1756_vm14 = vweird.f32 %v1748_v55 }
 0xec0   :  { %v1745_v56 = vpop.xlane.xlu0 %1744 }
 0xec1   :  { %v1747_v57 = vmul.f32 %v1745_v56, %v2440_v47 }
 0xec2   :  { %v2241_v58 = vpop.eup %2240 }
 0xec3   :  { %v1751_v50 = vmul.f32 %v2241_v58, %v1748_v55  ;;  %v1749_v60 = vadd.f32 1e-12, %v1747_v57  ;;  %vm1757_vm0 = vweird.f32 %v2241_v58 }
 0xec4   :  { %vm1758_vm15 = vmor %vm1756_vm14, %vm1757_vm0 }
 0xec5   :  { %v1752_v29 = vmul.f32 %v2241_v58, %v1751_v50  ;;  %2242 = vrsqrt.f32 %v1749_v60  ;;  %vm1766_vm13 = vweird.f32 %v1749_v60 }
 0xec7   :  { %v1753_v61 = vmul.f32 0.5, %v1752_v29 }
 0xec9   :  { %v1754_v63 = vsub.f32 1.5, %v1753_v61 }
 0xecb   :  { %v2243_v1 = vpop.eup %2242  ;;  %v1755_v62 = vmul.f32 %v2241_v58, %v1754_v63 }
 0xecc   :  { %v1761_v2 = vmul.f32 %v2243_v1, %v1749_v60  ;;  %vm1767_vm11 = vweird.f32 %v2243_v1 }
 0xecd   :  { %v1759_v3 = vsel %vm1758_vm15, %v2241_v58, %v1755_v62  ;;  %vm1768_vm1 = vmor %vm1766_vm13, %vm1767_vm11 }
 0xece   :  { %v1770_v49 = vmul.f32 %v1759_v3, %v1736_v39  ;;  %v1762_v4 = vmul.f32 %v2243_v1, %v1761_v2 }
 0xed0   :  { %v1773_v6 = vmul.f32 %v1772_v0, %v1770_v49  ;;  %v1763_v21 = vmul.f32 0.5, %v1762_v4 }
 0xed2   :  { %v1764_v31 = vsub.f32 1.5, %v1763_v21  ;;  %v2887_v10 = vadd.f32 %v1775_v5, %v1773_v6 }
 0xed4   :  { %v1765_v11 = vmul.f32 %v2243_v1, %v1764_v31  ;;  %2118 = vmatmul.msk.f32.vlgmr.msrb.gmra.mxu2 %vm146_vm6, %v2887_v10 }
 0xed6   :  { %v1769_v12 = vsel %vm1768_vm1, %v2243_v1, %v1765_v11  ;;  %vm1998_vm1 = vcmask 1040384  }
 0xed7   :  { %v1771_v13 = vmul.f32 %v1769_v12, %v1737_v42 }
 0xed9   :  { %v1774_v14 = vmul.f32 %v1772_v0, %v1771_v13 }
 0xedb   :  { %v2891_v16 = vadd.f32 %v1775_v5, %v1774_v14 }
 0xedd   :  { %2119 = vmatmul.msk.f32.gmra.mxu2 %vm146_vm6, %v2891_v16 }
 0xf57   :  { %v1807_v19 = vpop.f32.mrf.mxu2 }
 0xf58   :  { %v2896_v20 = vadd.f32 %v1807_v19, %v1783_v18 }
 0xf5a   :  { %v2899_v22 = vmul.f32 0.70710677, %v2896_v20 }
 0xf5c   :  { %v1817_v17 = vmul.f32 %v2899_v22, %v2899_v22 }
 0xf5e   :  { %v1818_v23 = vmin.f32 %v1817_v17, 16.0 }
 0xf60   :  { %v1819_v25 = vmul.f32 2.1237322e-06, %v1818_v23  ;;  %v1830_v15 = vmul.f32 3.8918573e-05, %v1818_v23  ;;  %v1810_v27 = vpop.f32.mrf.mxu2 }
 0xf61   :  { %v2909_v8 = vadd.f32 %v1810_v27, %v1783_v18 }
 0xf62   :  { %v1820_v33 = vadd.f32 0.00028619796, %v1819_v25  ;;  %v1831_v32 = vadd.f32 0.001143296, %v1830_v15 }
 0xf63   :  { %v2915_v35 = vmul.f32 0.70710677, %v2909_v8 }
 0xf64   :  { %v1821_v36 = vmul.f32 %v1820_v33, %v1818_v23  ;;  %v1832_v28 = vmul.f32 %v1831_v32, %v1818_v23 }
 0xf65   :  { %v1857_v37 = vmul.f32 %v2915_v35, %v2915_v35 }
 0xf66   :  { %v1833_v9 = vadd.f32 0.014752088, %v1832_v28  ;;  %v1822_v39 = vadd.f32 0.0036580483, %v1821_v36 }
 0xf67   :  { %v1858_v26 = vmin.f32 %v1857_v37, 16.0 }
 0xf68   :  { %v1834_v40 = vmul.f32 %v1833_v9, %v1818_v23  ;;  %v1823_v7 = vmul.f32 %v1822_v39, %v1818_v23  ;;  %v1813_v39 = vmul.f32 0.5, %v2896_v20  ;;  %v1910_v20 = vperm.slane %v2712_v52, 7 }
 0xf69   :  { %v1859_v59 = vmul.f32 2.1237322e-06, %v1858_v26  ;;  %v1870_v42 = vmul.f32 3.8918573e-05, %v1858_v26 }
 0xf6a   :  { %v1835_v43 = vadd.f32 0.112945676, %v1834_v40  ;;  %v1824_v57 = vadd.f32 0.05243302, %v1823_v7 }
 0xf6b   :  { %v1860_v46 = vadd.f32 0.00028619796, %v1859_v59  ;;  %v1871_v48 = vadd.f32 0.001143296, %v1870_v42 }
 0xf6c   :  { %v1836_v53 = vmul.f32 %v1835_v43, %v1818_v23  ;;  %v1825_v63 = vmul.f32 %v1824_v57, %v1818_v23 }
 0xf6d   :  { %v1861_v51 = vmul.f32 %v1860_v46, %v1858_v26  ;;  %v1872_v55 = vmul.f32 %v1871_v48, %v1858_v26  ;;  %v1814_v46 = vmul.f32 0.5, %v2909_v8 }
 0xf6e   :  { %v1837_v56 = vadd.f32 0.4994258, %v1836_v53  ;;  %v1826_v2 = vadd.f32 0.18741608, %v1825_v63 }
 0xf6f   :  { %v1873_v58 = vadd.f32 0.014752088, %v1872_v55  ;;  %v1862_v60 = vadd.f32 0.0036580483, %v1861_v51 }
 0xf70   :  { %v1838_v50 = vmul.f32 %v1837_v56, %v1818_v23  ;;  %v1827_v6 = vmul.f32 %v1826_v2, %v1818_v23 }
 0xf71   :  { %v1874_v29 = vmul.f32 %v1873_v58, %v1858_v26  ;;  %v1863_v62 = vmul.f32 %v1862_v60, %v1858_v26 }
 0xf72   :  { %v1839_v61 = vadd.f32 1.0, %v1838_v50  ;;  %v1828_v14 = vadd.f32 1.1283791, %v1827_v6 }
 0xf73   :  { %v1875_v1 = vadd.f32 0.112945676, %v1874_v29  ;;  %v1864_v49 = vadd.f32 0.05243302, %v1863_v62 }
 0xf74   :  { %2244 = vrcp.f32 %v1839_v61  ;;  %v1851_v13 = vand.u32 2147483648, %v1839_v61  ;;  %v1849_v19 = vand.u32 2147483647, %v1839_v61  ;;  %vm1845_vm3 = vweird.f32 %v1839_v61 }
 0xf75   :  { %v1876_v0 = vmul.f32 %v1875_v1, %v1858_v26  ;;  %v1865_v11 = vmul.f32 %v1864_v49, %v1858_v26  ;;  %v1829_v27 = vmul.f32 %v1828_v14, %v2899_v22 }
 0xf76   :  { %v1852_v25 = vor.u32 1.1754944e-38, %v1851_v13  ;;  %vm1850_vm5 = vcmp.eq.f32.partialorder %v1849_v19, 8.507059e+37 }
 0xf77   :  { %v1877_v3 = vadd.f32 0.4994258, %v1876_v0  ;;  %v1866_v17 = vadd.f32 0.18741608, %v1865_v11 }
 0xf79   :  { %v1878_v4 = vmul.f32 %v1877_v3, %v1858_v26  ;;  %v1867_v33 = vmul.f32 %v1866_v17, %v1858_v26 }
 0xf7a   :  { %v2245_v5 = vpop.eup %2244 }
 0xf7b   :  { %v1841_v21 = vmul.f32 %v2245_v5, %v1839_v61  ;;  %v1879_v31 = vadd.f32 1.0, %v1878_v4  ;;  %vm1846_vm2 = vweird.f32 %v2245_v5  ;;  %v1868_v37 = vadd.f32 1.1283791, %v1867_v33 }
 0xf7c   :  { %vm1847_vm4 = vmor %vm1845_vm3, %vm1846_vm2  ;;  %vm2000_vm2 = vcmask 254976  }
 0xf7d   :  { %v1842_v12 = vsub.f32 1.0, %v1841_v21  ;;  %2246 = vrcp.f32 %v1879_v31  ;;  %v1891_v45 = vand.u32 2147483648, %v1879_v31  ;;  %v1889_v38 = vand.u32 2147483647, %v1879_v31 }
 0xf7e   :  { %vm1885_vm8 = vweird.f32 %v1879_v31  ;;  %v1869_v42 = vmul.f32 %v1868_v37, %v2915_v35 }
 0xf7f   :  { %v1843_v18 = vmul.f32 %v2245_v5, %v1842_v12  ;;  %v1892_v22 = vor.u32 1.1754944e-38, %v1891_v45  ;;  %vm1890_vm10 = vcmp.eq.f32.partialorder %v1889_v38, 8.507059e+37  ;;  %v53_v12 = vld [vmem:[%s2971_s8 + $0x10] sm:$0x3] }
 0xf80   :  { %v1986_v19 = vperm.slane %v53_v12, 0 }
 0xf81   :  { %v1844_v24 = vadd.f32 %v2245_v5, %v1843_v18 }
 0xf83   :  { %v2247_v15 = vpop.eup %2246  ;;  %v1848_v30 = vsel %vm1847_vm4, %v2245_v5, %v1844_v24 }
 0xf84   :  { %v1853_v23 = vsel %vm1850_vm5, %v1852_v25, %v1848_v30  ;;  %v1881_v32 = vmul.f32 %v2247_v15, %v1879_v31  ;;  %vm1886_vm7 = vweird.f32 %v2247_v15 }
 0xf85   :  { %v1854_v34 = vmul.f32 %v1853_v23, %v1829_v27  ;;  %vm1887_vm9 = vmor %vm1885_vm8, %vm1886_vm7 }
 0xf86   :  { %v1882_v36 = vsub.f32 1.0, %v1881_v32 }
 0xf87   :  { %v2120_v28 = vclamps-f32 %v1854_v34, 1.0 }
 0xf88   :  { %v1883_v9 = vmul.f32 %v2247_v15, %v1882_v36 }
 0xf89   :  { %v1897_v40 = vadd.f32 1.0, %v2120_v28 }
 0xf8a   :  { %v1884_v41 = vadd.f32 %v2247_v15, %v1883_v9 }
 0xf8b   :  { %v1899_v59 = vmul.f32 %v1897_v40, %v1813_v39 }
 0xf8c   :  { %v1888_v26 = vsel %vm1887_vm9, %v2247_v15, %v1884_v41  ;;  %v1989_v15 = vperm.slane %v53_v12, 1 }
 0xf8d   :  { %v1893_v43 = vsel %vm1890_vm10, %v1892_v22, %v1888_v26  ;;  %2130 = vmatmul.msk.f32.vlgmr.msra.gmra.mxu0 %vm1018_vm12, %v1899_v59 }
 0xf8e   :  { %v1894_v44 = vmul.f32 %v1893_v43, %v1869_v42 }
 0xf90   :  { %v2121_v7 = vclamps-f32 %v1894_v44, 1.0 }
 0xf92   :  { %v1898_v48 = vadd.f32 1.0, %v2121_v7 }
 0xf94   :  { %v1900_v53 = vmul.f32 %v1898_v48, %v1814_v46 }
 0xf96   :  { %2131 = vmatmul.msk.f32.gmra.mxu0 %vm1018_vm12, %v1900_v53 }
0x100a   :  { %v1934_v54 = vpop.f32.mrf.mxu0 }
0x100b   :  { %v1935_v51 = vadd.f32 %v1934_v54, %v1910_v20 }
0x100d   :  { %v1940_v55 = vadd.f32 %v1935_v51, %v2887_v10 }
0x100f   :  { %v1942_v35 = vsel %vm146_vm6, %v1940_v55, 0.0 }
0x1010   :  { %1943 = vadd.xlane.f32.xlu1 %v1942_v35 }
0x1013   :  { %v1937_v56 = vpop.f32.mrf.mxu0 }
0x1014   :  { %v1938_v57 = vadd.f32 %v1937_v56, %v1910_v20 }
0x1016   :  { %v1941_v58 = vadd.f32 %v1938_v57, %v2891_v16 }
0x1018   :  { %v1945_v50 = vsel %vm146_vm6, %v1941_v58, 0.0 }
0x1019   :  { %1946 = vadd.xlane.f32.xlu0 %v1945_v50 }
0x1083   :  { %v1944_v8 = vpop.xlane.xlu1 %1943 }
0x1084   :  { %v1948_v60 = vmul.f32 %v1944_v8, %v2440_v47 }
0x1086   :  { %v1950_v29 = vsub.f32 %v1940_v55, %v1948_v60 }
0x1088   :  { %v1952_v61 = vmul.f32 %v1950_v29, %v1950_v29 }
0x108a   :  { %v1954_v52 = vsel %vm146_vm6, %v1952_v61, 0.0 }
0x108b   :  { %1955 = vadd.xlane.f32.xlu0 %v1954_v52 }
0x108c   :  { %v1947_v63 = vpop.xlane.xlu0 %1946 }
0x108d   :  { %v1949_v10 = vmul.f32 %v1947_v63, %v2440_v47 }
0x108f   :  { %v1951_v1 = vsub.f32 %v1941_v58, %v1949_v10 }
0x1091   :  { %v1953_v62 = vmul.f32 %v1951_v1, %v1951_v1 }
0x1093   :  { %v1957_v0 = vsel %vm146_vm6, %v1953_v62, 0.0 }
0x1094   :  { %1958 = vadd.xlane.f32.xlu2 %v1957_v0 }
0x10fe   :  { %v1956_v16 = vpop.xlane.xlu0 %1955 }
0x10ff   :  { %v1960_v2 = vmul.f32 %v1956_v16, %v2440_v47 }
0x1101   :  { %v1962_v3 = vadd.f32 1e-12, %v1960_v2 }
0x1103   :  { %2248 = vrsqrt.f32 %v1962_v3  ;;  %vm1970_vm0 = vweird.f32 %v1962_v3 }
0x1107   :  { %v1959_v49 = vpop.xlane.xlu2 %1958 }
0x1108   :  { %v1961_v4 = vmul.f32 %v1959_v49, %v2440_v47 }
0x1109   :  { %v2249_v5 = vpop.eup %2248 }
0x110a   :  { %v1965_v6 = vmul.f32 %v2249_v5, %v1962_v3  ;;  %v1963_v21 = vadd.f32 1e-12, %v1961_v4  ;;  %vm1971_vm12 = vweird.f32 %v2249_v5 }
0x110b   :  { %vm1972_vm14 = vmor %vm1970_vm0, %vm1971_vm12 }
0x110c   :  { %v1966_v31 = vmul.f32 %v2249_v5, %v1965_v6  ;;  %2250 = vrsqrt.f32 %v1963_v21  ;;  %vm1980_vm11 = vweird.f32 %v1963_v21 }
0x110e   :  { %v1967_v11 = vmul.f32 0.5, %v1966_v31 }
0x1110   :  { %v1968_v13 = vsub.f32 1.5, %v1967_v11 }
0x1112   :  { %v2251_v14 = vpop.eup %2250  ;;  %v1969_v18 = vmul.f32 %v2249_v5, %v1968_v13 }
0x1113   :  { %v1975_v17 = vmul.f32 %v2251_v14, %v1963_v21  ;;  %vm1981_vm15 = vweird.f32 %v2251_v14 }
0x1114   :  { %v1973_v24 = vsel %vm1972_vm14, %v2249_v5, %v1969_v18  ;;  %vm1982_vm13 = vmor %vm1980_vm11, %vm1981_vm15 }
0x1115   :  { %v1984_v47 = vmul.f32 %v1973_v24, %v1950_v29  ;;  %v1976_v25 = vmul.f32 %v2251_v14, %v1975_v17 }
0x1117   :  { %v1987_v27 = vmul.f32 %v1986_v19, %v1984_v47  ;;  %v1977_v30 = vmul.f32 0.5, %v1976_v25 }
0x1119   :  { %v1978_v23 = vsub.f32 1.5, %v1977_v30  ;;  %v1990_v33 = vadd.f32 %v1989_v15, %v1987_v27 }
0x111b   :  { %v1979_v32 = vmul.f32 %v2251_v14, %v1978_v23  ;;  %1992 = vst.msk [vmem:[#allocation2] sm:$0xff] %vm146_vm6, %v1990_v33 }
0x111d   :  { %v1983_v34 = vsel %vm1982_vm13, %v2251_v14, %v1979_v32 }
0x111e   :  { %v1985_v36 = vmul.f32 %v1983_v34, %v1951_v1 }
0x1120   :  { %v1988_v28 = vmul.f32 %v1986_v19, %v1985_v36 }
0x1122   :  { %v1991_v45 = vadd.f32 %v1989_v15, %v1988_v28 }
0x1124   :  { %1994 = vst.msk [vmem:[#allocation2 + $0x8] sm:$0xff] %vm146_vm6, %v1991_v45  ;;  %v1996_v37 = vrot.slane %v1991_v45, 7 }
0x1125   :  { %2014 = dma.vmem_to_hbm [thread:$0]  %s2007_s2, 256, %s2009_s5, [#allocation3], %s2323_s9, %s2323_s9, %s2319_s3  }
0x1126   :  { %v1999_v9 = vsel %vm1998_vm1, %v1990_v33, %v1996_v37 }
0x1127   :  { %2001 = vst.msk [vmem:[#allocation4] sm:$0x3] %vm2000_vm2, %v1999_v9 }
0x1128   :  { %2025 = dma.vmem_to_hbm [thread:$0]  %s2021_s27, 32, %s2023_s12, [#allocation5]  }
0x1129   :  { %2300 = dma.done.wait [#allocation3], 256  }
0x112a   :  { %2301 = vsyncadd [#allocation3], 4294967040 }
0x112b   :  { %2302 = dma.done.wait [#allocation5], 32  }
0x112c   :  { %2303 = vsyncadd [#allocation5], 4294967264 }
0x112d   :  { %2034 = vsyncpa [#allocation3], 1 }
0x112e   :  { %2035 = vsyncpa [#allocation5], 1 }

</bundles_post_ra>
